<compile_context>
chip_gen: v6e
topology: v6e:2x2x1
jax: 0.10.0
libtpu: 0.0.40
codegen_flags: <defaults>
</compile_context>

<pallas_src>
import functools
import math

import numpy as np
import jax
import jax.numpy as jnp
from jax.experimental import pallas as pl
from jax.experimental.pallas import tpu as pltpu

NUM_HEADS = 8
EMBED = 256
HEAD_DIM = EMBED // NUM_HEADS  # 32
CIN = 128
KSIZE = 3
SEQ_L = 4          # implied by Linear(256 * 4, 128)
OUT_PAD = 128      # lane-dense output slab width (7 + 7 + 49 = 63 used)
NEG_INF = -1e30


# ---------------------------------------------------------------------------
# Fused Pallas kernel
# ---------------------------------------------------------------------------
def _fused_kernel(x_ref, bmask_ref, hmask_ref, cw_ref, cb_ref, ipw_ref,
                  ipb_ref, opw_ref, opb_ref, t1w_ref, t1b_ref, t2w_ref,
                  t2b_ref, h1w_ref, h1b_ref, h2w_ref, h2b_ref, o_ref,
                  *, batch, seq_l):
    B, L = batch, seq_l
    LB = L * B
    bf = jnp.bfloat16

    def mm(x, w_ref, b_ref=None):
        y = jnp.dot(x.astype(bf), w_ref[...],
                    preferred_element_type=jnp.float32)
        if b_ref is not None:
            y = y + b_ref[...]
        return y

    # --- Conv1d(128->256, k=3, pad=1): in-kernel im2col (two sublane shifts
    # of the (l, b)-ordered rows), then ONE (LB,384)x(384,256) matmul --------
    x = x_ref[...]                                            # (LB, 128) f32
    zrow = jnp.zeros((B, CIN), x.dtype)
    x_prev = jnp.concatenate([zrow, x[:LB - B, :]], axis=0)   # rows (l-1, b)
    x_next = jnp.concatenate([x[B:, :], zrow], axis=0)        # rows (l+1, b)
    patches = jnp.concatenate([x_prev, x, x_next], axis=1)    # (LB, 3*128)
    x_seq = mm(patches, cw_ref, cb_ref)                       # (LB, 256)

    # --- MultiheadAttention(256, 8), q = k = v: all heads fused -------------
    qkv = mm(x_seq, ipw_ref, ipb_ref)                         # (LB, 768); q pre-scaled
    q = qkv[:, :EMBED]
    k = qkv[:, EMBED:2 * EMBED]
    v = qkv[:, 2 * EMBED:]

    hmask = hmask_ref[...]                                    # (H*LB, 256) 0/1
    k_exp = (jnp.concatenate([k] * NUM_HEADS, axis=0) * hmask).astype(bf)
    v_exp = (jnp.concatenate([v] * NUM_HEADS, axis=0) * hmask).astype(bf)

    # scores[r, h*LB + c] = q_h[r] . k_h[c]   (single MXU op, no head loop)
    s = jax.lax.dot_general(q.astype(bf), k_exp, (((1,), (1,)), ((), ())),
                            preferred_element_type=jnp.float32)   # (LB, H*LB)
    s = s + bmask_ref[...]                       # precomputed same-batch mask
    s = s - jnp.max(s, axis=-1, keepdims=True)   # per-row shift (valid per head)
    p = jnp.exp(s).astype(bf)                    # (LB, H*LB)

    attn_un = jnp.dot(p, v_exp, preferred_element_type=jnp.float32)      # (LB, 256)
    denom = jnp.dot(p, hmask.astype(bf), preferred_element_type=jnp.float32)
    attn = attn_un * pl.reciprocal(denom, approx=True)        # per-head softmax norm

    x_attn = mm(attn, opw_ref, opb_ref)                       # (LB, 256)

    # --- transition: Linear(256*4, 128) as ONE matmul against lane-stacked
    # weight + 4 aligned block adds, ReLU, Linear(128, 64) --------------------
    y = mm(x_attn, t1w_ref)                                   # (LB, L*128)
    acc = t1b_ref[...]                                        # (1, 128)
    for l in range(L):
        acc = acc + y[l * B:(l + 1) * B, l * 128:(l + 1) * 128]
    h1 = jnp.maximum(acc, 0.0)                                # (B, 128)
    hfeat = mm(h1, t2w_ref, t2b_ref)                          # (B, 64)

    # --- fused heads (delta | sigma | depth); ba_layer folded into stage 2 --
    g = jnp.maximum(mm(hfeat, h1w_ref, h1b_ref), 0.0)         # (B, 96)
    z = mm(g, h2w_ref, h2b_ref)                               # (B, 128) slab
    lane = jax.lax.broadcasted_iota(jnp.int32, (B, OUT_PAD), 1)
    z = jnp.where((lane >= 7) & (lane < 14), jax.nn.sigmoid(z), z)
    o_ref[...] = z                                            # one lane-dense store


def _full_spec(shape):
    nd = len(shape)
    return pl.BlockSpec(shape, lambda i, _nd=nd: (0,) * _nd)


def _fused_call(x_rows, bmask, hmask, wp, batch):
    args = (x_rows, bmask, hmask,
            wp["conv_wT"], wp["conv_b"],
            wp["ipwT"], wp["ipb"],
            wp["opwT"], wp["opb"],
            wp["t1w"], wp["t1b"],
            wp["t2wT"], wp["t2b"],
            wp["h1wT"], wp["h1b"],
            wp["h2wT"], wp["h2b"])
    kernel = functools.partial(_fused_kernel, batch=batch, seq_l=SEQ_L)
    # TODO(synk): if this forward runs in a tight RAFT-style loop, add a grid
    # axis over steps with constant weight index_maps so the ~1 MiB of weights
    # stays VMEM-resident, and mark it "parallel" to use both v7x TensorCores.
    return pl.pallas_call(
        kernel,
        out_shape=jax.ShapeDtypeStruct((batch, OUT_PAD), jnp.float32),
        grid=(1,),
        in_specs=[_full_spec(a.shape) for a in args],
        out_specs=_full_spec((batch, OUT_PAD)),
        compiler_params=pltpu.CompilerParams(
            dimension_semantics=("arbitrary",)),
    )(*args)


# ---------------------------------------------------------------------------
# Deterministic parameter init (PyTorch-style uniform fan-in bounds)
# ---------------------------------------------------------------------------
def _linear_init(key, out_f, in_f):
    k1, k2 = jax.random.split(key)
    bound = 1.0 / math.sqrt(in_f)
    w = jax.random.uniform(k1, (out_f, in_f), jnp.float32, -bound, bound)
    b = jax.random.uniform(k2, (out_f,), jnp.float32, -bound, bound)
    return w, b


def init_params(key):
    ks = jax.random.split(key, 12)
    p = {}
    k1, k2 = jax.random.split(ks[0])
    bound = 1.0 / math.sqrt(CIN * KSIZE)
    p["conv_w"] = jax.random.uniform(k1, (256, CIN, KSIZE), jnp.float32, -bound, bound)
    p["conv_b"] = jax.random.uniform(k2, (256,), jnp.float32, -bound, bound)
    p["in_proj_w"], p["in_proj_b"] = _linear_init(ks[1], 3 * EMBED, EMBED)
    p["out_proj_w"], p["out_proj_b"] = _linear_init(ks[2], EMBED, EMBED)
    p["t1_w"], p["t1_b"] = _linear_init(ks[3], 128, EMBED * SEQ_L)
    p["t2_w"], p["t2_b"] = _linear_init(ks[4], 64, 128)
    p["d1_w"], p["d1_b"] = _linear_init(ks[5], 32, 64)
    p["d2_w"], p["d2_b"] = _linear_init(ks[6], 7, 32)
    p["s1_w"], p["s1_b"] = _linear_init(ks[7], 32, 64)
    p["s2_w"], p["s2_b"] = _linear_init(ks[8], 7, 32)
    p["ba_w"], p["ba_b"] = _linear_init(ks[9], 7, 7)
    p["dep1_w"], p["dep1_b"] = _linear_init(ks[10], 32, 64)
    p["dep2_w"], p["dep2_b"] = _linear_init(ks[11], 49, 32)
    return p


def pack_params(p):
    """One-time re-layout: pre-transpose weights, fold the attention q-scale
    into in_proj, lane-stack the transition weight, fuse the three heads and
    fold ba_layer + output padding into the final matmul; bf16 weights with
    f32 biases (f32 accumulation in-kernel)."""
    wdt = jnp.bfloat16
    w = {}
    # conv: patches are [tap0 | tap1 | tap2] blocks of 128 channels each.
    w["conv_wT"] = (p["conv_w"].transpose(2, 1, 0)
                    .reshape(KSIZE * CIN, 256).astype(wdt))            # (384, 256)
    w["conv_b"] = p["conv_b"].reshape(1, -1)
    # in_proj with the q columns pre-scaled by 1/sqrt(head_dim).
    scale = 1.0 / math.sqrt(HEAD_DIM)
    qscale = jnp.concatenate([jnp.full((EMBED,), scale, jnp.float32),
                              jnp.ones((2 * EMBED,), jnp.float32)])
    w["ipwT"] = (p["in_proj_w"] * qscale[:, None]).T.astype(wdt)       # (256, 768)
    w["ipb"] = (p["in_proj_b"] * qscale).reshape(1, -1)
    w["opwT"] = p["out_proj_w"].T.astype(wdt)                          # (256, 256)
    w["opb"] = p["out_proj_b"].reshape(1, -1)
    # transition-1 lane-stacked: block l has W_l[e, n] = t1_w[n, e*L + l].
    t1T = p["t1_w"].T.reshape(EMBED, SEQ_L, 128)                       # [e, l, n]
    w["t1w"] = jnp.concatenate([t1T[:, l, :] for l in range(SEQ_L)],
                               axis=1).astype(wdt)                     # (256, 512)
    w["t1b"] = p["t1_b"].reshape(1, -1)
    w["t2wT"] = p["t2_w"].T.astype(wdt)                                # (128, 64)
    w["t2b"] = p["t2_b"].reshape(1, -1)
    # fused head stage 1: [delta | sigma | depth]  (64, 96)
    w["h1wT"] = jnp.concatenate([p["d1_w"].T, p["s1_w"].T, p["dep1_w"].T],
                                axis=1).astype(wdt)
    w["h1b"] = jnp.concatenate([p["d1_b"], p["s1_b"], p["dep1_b"]]).reshape(1, -1)
    # fused head stage 2, ba_layer folded into the pose block, padded to 128:
    # lanes [0:7]=pose, [7:14]=sigma(pre-sigmoid), [14:63]=depth, rest zero.
    W2 = jnp.zeros((96, OUT_PAD), jnp.float32)
    W2 = W2.at[0:32, 0:7].set(p["d2_w"].T @ p["ba_w"].T)
    W2 = W2.at[32:64, 7:14].set(p["s2_w"].T)
    W2 = W2.at[64:96, 14:63].set(p["dep2_w"].T)
    b2 = jnp.zeros((OUT_PAD,), jnp.float32)
    b2 = b2.at[0:7].set(p["d2_b"] @ p["ba_w"].T + p["ba_b"])
    b2 = b2.at[7:14].set(p["s2_b"])
    b2 = b2.at[14:63].set(p["dep2_b"])
    w["h2wT"] = W2.astype(wdt)
    w["h2b"] = b2.reshape(1, -1)
    return w


# ---------------------------------------------------------------------------
# Static masks (precomputed; zero in-kernel index math)
# ---------------------------------------------------------------------------
def _build_masks(batch):
    LB = SEQ_L * batch
    r = np.arange(LB)[:, None]                    # query row = l*B + b
    j = np.arange(NUM_HEADS * LB)[None, :]        # key col = h*LB + c
    same_batch = (r % batch) == ((j % LB) % batch)
    bmask = np.where(same_batch, 0.0, NEG_INF).astype(np.float32)   # (LB, H*LB)
    jr = np.arange(NUM_HEADS * LB)[:, None]
    e = np.arange(EMBED)[None, :]
    hmask = ((jr // LB) == (e // HEAD_DIM)).astype(np.float32)      # (H*LB, 256)
    return jnp.asarray(bmask), jnp.asarray(hmask)


# ---------------------------------------------------------------------------
# Forward pass: one tiny wrapper transpose, everything else in the fused kernel
# ---------------------------------------------------------------------------
def update_operator_forward(wp, correlation_features, context_features):
    del context_features  # unused in the reference module's forward as well
    B, Cin, L = correlation_features.shape
    assert Cin == CIN and L == SEQ_L
    # (B, 128, L) -> rows ordered (l, b) with channels on lanes.
    x_rows = correlation_features.transpose(2, 0, 1).reshape(L * B, CIN)
    bmask, hmask = _build_masks(B)
    out = _fused_call(x_rows, bmask, hmask, wp, batch=B)      # (B, 128)
    updated_pose = out[:, 0:7]
    sigma = out[:, 7:14]
    predicted_depth = out[:, 14:63].reshape(B, 1, 7, 7)
    return updated_pose, sigma, predicted_depth


if __name__ == "__main__":
    key = jax.random.PRNGKey(0)
    pkey, xkey, ckey = jax.random.split(key, 3)
    params = init_params(pkey)
    packed = pack_params(params)

    B = 2
    correlation_features = jax.random.normal(xkey, (B, CIN, SEQ_L), jnp.float32)
    context_features = jax.random.normal(ckey, (B, CIN, SEQ_L), jnp.float32)

    fwd = jax.jit(update_operator_forward)
    updated_pose, sigma, predicted_depth = fwd(packed, correlation_features,
                                               context_features)
    jax.block_until_ready((updated_pose, sigma, predicted_depth))

    assert updated_pose.shape == (B, 7)
    assert sigma.shape == (B, 7)
    assert predicted_depth.shape == (B, 1, 7, 7)
    assert bool(jnp.all(jnp.isfinite(updated_pose)))
    assert bool(jnp.all(jnp.isfinite(predicted_depth)))
    assert bool(jnp.all((sigma >= 0.0) & (sigma <= 1.0)))
    print("KERNEL_OK")
</pallas_src>

<mosaic_0001>
module attributes {stable_mosaic.version = 11 : i64} {
  func.func @_fused_kernel(%arg0: i32, %arg1: memref<8x128xf32, #tpu.memory_space<vmem>>, %arg2: memref<8x64xf32, #tpu.memory_space<vmem>>, %arg3: memref<64x256xf32, #tpu.memory_space<vmem>>, %arg4: memref<384x256xbf16, #tpu.memory_space<vmem>>, %arg5: memref<1x256xf32, #tpu.memory_space<vmem>>, %arg6: memref<256x768xbf16, #tpu.memory_space<vmem>>, %arg7: memref<1x768xf32, #tpu.memory_space<vmem>>, %arg8: memref<256x256xbf16, #tpu.memory_space<vmem>>, %arg9: memref<1x256xf32, #tpu.memory_space<vmem>>, %arg10: memref<256x512xbf16, #tpu.memory_space<vmem>>, %arg11: memref<1x128xf32, #tpu.memory_space<vmem>>, %arg12: memref<128x64xbf16, #tpu.memory_space<vmem>>, %arg13: memref<1x64xf32, #tpu.memory_space<vmem>>, %arg14: memref<64x96xbf16, #tpu.memory_space<vmem>>, %arg15: memref<1x96xf32, #tpu.memory_space<vmem>>, %arg16: memref<96x128xbf16, #tpu.memory_space<vmem>>, %arg17: memref<1x128xf32, #tpu.memory_space<vmem>>, %arg18: memref<2x128xf32, #tpu.memory_space<vmem>>) attributes {dimension_semantics = [#tpu.dimension_semantics<arbitrary>], iteration_bounds = array<i64: 1>, scalar_prefetch = 0 : i64, scratch_operands = 0 : i64, tpu.core_type = #tpu.core_type<tc>, window_params = [{pipeline_mode = #tpu.pipeline_mode<synchronous>, transform_indices = @transform_0, window_bounds = array<i64: 8, 128>}, {pipeline_mode = #tpu.pipeline_mode<synchronous>, transform_indices = @transform_1, window_bounds = array<i64: 8, 64>}, {pipeline_mode = #tpu.pipeline_mode<synchronous>, transform_indices = @transform_2, window_bounds = array<i64: 64, 256>}, {pipeline_mode = #tpu.pipeline_mode<synchronous>, transform_indices = @transform_3, window_bounds = array<i64: 384, 256>}, {pipeline_mode = #tpu.pipeline_mode<synchronous>, transform_indices = @transform_4, window_bounds = array<i64: 1, 256>}, {pipeline_mode = #tpu.pipeline_mode<synchronous>, transform_indices = @transform_5, window_bounds = array<i64: 256, 768>}, {pipeline_mode = #tpu.pipeline_mode<synchronous>, transform_indices = @transform_6, window_bounds = array<i64: 1, 768>}, {pipeline_mode = #tpu.pipeline_mode<synchronous>, transform_indices = @transform_7, window_bounds = array<i64: 256, 256>}, {pipeline_mode = #tpu.pipeline_mode<synchronous>, transform_indices = @transform_8, window_bounds = array<i64: 1, 256>}, {pipeline_mode = #tpu.pipeline_mode<synchronous>, transform_indices = @transform_9, window_bounds = array<i64: 256, 512>}, {pipeline_mode = #tpu.pipeline_mode<synchronous>, transform_indices = @transform_10, window_bounds = array<i64: 1, 128>}, {pipeline_mode = #tpu.pipeline_mode<synchronous>, transform_indices = @transform_11, window_bounds = array<i64: 128, 64>}, {pipeline_mode = #tpu.pipeline_mode<synchronous>, transform_indices = @transform_12, window_bounds = array<i64: 1, 64>}, {pipeline_mode = #tpu.pipeline_mode<synchronous>, transform_indices = @transform_13, window_bounds = array<i64: 64, 96>}, {pipeline_mode = #tpu.pipeline_mode<synchronous>, transform_indices = @transform_14, window_bounds = array<i64: 1, 96>}, {pipeline_mode = #tpu.pipeline_mode<synchronous>, transform_indices = @transform_15, window_bounds = array<i64: 96, 128>}, {pipeline_mode = #tpu.pipeline_mode<synchronous>, transform_indices = @transform_16, window_bounds = array<i64: 1, 128>}, {pipeline_mode = #tpu.pipeline_mode<synchronous>, transform_indices = @transform_17, window_bounds = array<i64: 2, 128>}]} {
    %c0 = arith.constant 0 : index
    %c0_0 = arith.constant 0 : index
    %0 = vector.load %arg1[%c0, %c0_0] : memref<8x128xf32, #tpu.memory_space<vmem>>, vector<8x128xf32>
    %cst = arith.constant 0.000000e+00 : f32
    %1 = vector.broadcast %cst : f32 to vector<2x128xf32>
    %2 = vector.extract_strided_slice %0 {offsets = [0, 0], sizes = [6, 128], strides = [1, 1]} : vector<8x128xf32> to vector<6x128xf32>
    %3 = tpu.concatenate %1, %2 in 0 : vector<2x128xf32>, vector<6x128xf32> -> vector<8x128xf32>
    %4 = vector.extract_strided_slice %0 {offsets = [2, 0], sizes = [6, 128], strides = [1, 1]} : vector<8x128xf32> to vector<6x128xf32>
    %5 = tpu.concatenate %4, %1 in 0 : vector<6x128xf32>, vector<2x128xf32> -> vector<8x128xf32>
    %6 = tpu.concatenate %3, %0, %5 in 1 : vector<8x128xf32>, vector<8x128xf32>, vector<8x128xf32> -> vector<8x384xf32>
    %7 = arith.truncf %6 : vector<8x384xf32> to vector<8x384xbf16>
    %c0_1 = arith.constant 0 : index
    %c0_2 = arith.constant 0 : index
    %8 = vector.load %arg4[%c0_1, %c0_2] : memref<384x256xbf16, #tpu.memory_space<vmem>>, vector<384x256xbf16>
    %cst_3 = arith.constant dense<0.000000e+00> : vector<8x256xf32>
    %9 = tpu.matmul %7, %8, %cst_3 {dimension_numbers = #tpu.dot_dimension_numbers<[1], [0], [0], [1], [0, 0, 1, 1], [], []>} : vector<8x384xbf16>, vector<384x256xbf16>, vector<8x256xf32> -> vector<8x256xf32>
    %c0_4 = arith.constant 0 : index
    %c0_5 = arith.constant 0 : index
    %10 = vector.load %arg5[%c0_4, %c0_5] : memref<1x256xf32, #tpu.memory_space<vmem>>, vector<1x256xf32>
    %11 = vector.broadcast %10 : vector<1x256xf32> to vector<8x256xf32>
    %12 = arith.addf %9, %11 : vector<8x256xf32>
    %13 = arith.truncf %12 : vector<8x256xf32> to vector<8x256xbf16>
    %c0_6 = arith.constant 0 : index
    %c0_7 = arith.constant 0 : index
    %14 = vector.load %arg6[%c0_6, %c0_7] : memref<256x768xbf16, #tpu.memory_space<vmem>>, vector<256x768xbf16>
    %cst_8 = arith.constant dense<0.000000e+00> : vector<8x768xf32>
    %15 = tpu.matmul %13, %14, %cst_8 {dimension_numbers = #tpu.dot_dimension_numbers<[1], [0], [0], [1], [0, 0, 1, 1], [], []>} : vector<8x256xbf16>, vector<256x768xbf16>, vector<8x768xf32> -> vector<8x768xf32>
    %c0_9 = arith.constant 0 : index
    %c0_10 = arith.constant 0 : index
    %16 = vector.load %arg7[%c0_9, %c0_10] : memref<1x768xf32, #tpu.memory_space<vmem>>, vector<1x768xf32>
    %17 = vector.broadcast %16 : vector<1x768xf32> to vector<8x768xf32>
    %18 = arith.addf %15, %17 : vector<8x768xf32>
    %19 = vector.extract_strided_slice %18 {offsets = [0, 0], sizes = [8, 256], strides = [1, 1]} : vector<8x768xf32> to vector<8x256xf32>
    %20 = vector.extract_strided_slice %18 {offsets = [0, 256], sizes = [8, 256], strides = [1, 1]} : vector<8x768xf32> to vector<8x256xf32>
    %21 = vector.extract_strided_slice %18 {offsets = [0, 512], sizes = [8, 256], strides = [1, 1]} : vector<8x768xf32> to vector<8x256xf32>
    %c0_11 = arith.constant 0 : index
    %c0_12 = arith.constant 0 : index
    %22 = vector.load %arg3[%c0_11, %c0_12] : memref<64x256xf32, #tpu.memory_space<vmem>>, vector<64x256xf32>
    %23 = tpu.concatenate %20, %20, %20, %20, %20, %20, %20, %20 in 0 : vector<8x256xf32>, vector<8x256xf32>, vector<8x256xf32>, vector<8x256xf32>, vector<8x256xf32>, vector<8x256xf32>, vector<8x256xf32>, vector<8x256xf32> -> vector<64x256xf32>
    %24 = arith.mulf %23, %22 : vector<64x256xf32>
    %25 = arith.truncf %24 : vector<64x256xf32> to vector<64x256xbf16>
    %26 = tpu.concatenate %21, %21, %21, %21, %21, %21, %21, %21 in 0 : vector<8x256xf32>, vector<8x256xf32>, vector<8x256xf32>, vector<8x256xf32>, vector<8x256xf32>, vector<8x256xf32>, vector<8x256xf32>, vector<8x256xf32> -> vector<64x256xf32>
    %27 = arith.mulf %26, %22 : vector<64x256xf32>
    %28 = arith.truncf %27 : vector<64x256xf32> to vector<64x256xbf16>
    %29 = arith.truncf %19 : vector<8x256xf32> to vector<8x256xbf16>
    %cst_13 = arith.constant dense<0.000000e+00> : vector<8x64xf32>
    %30 = tpu.matmul %29, %25, %cst_13 {dimension_numbers = #tpu.dot_dimension_numbers<[1], [1], [0], [0], [0, 0, 1, 0], [], []>} : vector<8x256xbf16>, vector<64x256xbf16>, vector<8x64xf32> -> vector<8x64xf32>
    %c0_14 = arith.constant 0 : index
    %c0_15 = arith.constant 0 : index
    %31 = vector.load %arg2[%c0_14, %c0_15] : memref<8x64xf32, #tpu.memory_space<vmem>>, vector<8x64xf32>
    %32 = arith.addf %30, %31 : vector<8x64xf32>
    %cst_16 = arith.constant dense<0xFF800000> : vector<8xf32>
    %33 = vector.multi_reduction <maximumf>, %32, %cst_16 [1] : vector<8x64xf32> to vector<8xf32>
    %34 = vector.shape_cast %33 : vector<8xf32> to vector<8x1xf32>
    %35 = vector.broadcast %34 : vector<8x1xf32> to vector<8x64xf32>
    %36 = arith.subf %32, %35 : vector<8x64xf32>
    %37 = math.exp %36 : vector<8x64xf32>
    %38 = arith.truncf %37 : vector<8x64xf32> to vector<8x64xbf16>
    %cst_17 = arith.constant dense<0.000000e+00> : vector<8x256xf32>
    %39 = tpu.matmul %38, %28, %cst_17 {dimension_numbers = #tpu.dot_dimension_numbers<[1], [0], [0], [1], [0, 0, 1, 1], [], []>} : vector<8x64xbf16>, vector<64x256xbf16>, vector<8x256xf32> -> vector<8x256xf32>
    %40 = arith.truncf %22 : vector<64x256xf32> to vector<64x256xbf16>
    %cst_18 = arith.constant dense<0.000000e+00> : vector<8x256xf32>
    %41 = tpu.matmul %38, %40, %cst_18 {dimension_numbers = #tpu.dot_dimension_numbers<[1], [0], [0], [1], [0, 0, 1, 1], [], []>} : vector<8x64xbf16>, vector<64x256xbf16>, vector<8x256xf32> -> vector<8x256xf32>
    %42 = tpu.reciprocal %41 {approx = true} : vector<8x256xf32> -> vector<8x256xf32>
    %43 = arith.mulf %39, %42 : vector<8x256xf32>
    %44 = arith.truncf %43 : vector<8x256xf32> to vector<8x256xbf16>
    %c0_19 = arith.constant 0 : index
    %c0_20 = arith.constant 0 : index
    %45 = vector.load %arg8[%c0_19, %c0_20] : memref<256x256xbf16, #tpu.memory_space<vmem>>, vector<256x256xbf16>
    %cst_21 = arith.constant dense<0.000000e+00> : vector<8x256xf32>
    %46 = tpu.matmul %44, %45, %cst_21 {dimension_numbers = #tpu.dot_dimension_numbers<[1], [0], [0], [1], [0, 0, 1, 1], [], []>} : vector<8x256xbf16>, vector<256x256xbf16>, vector<8x256xf32> -> vector<8x256xf32>
    %c0_22 = arith.constant 0 : index
    %c0_23 = arith.constant 0 : index
    %47 = vector.load %arg9[%c0_22, %c0_23] : memref<1x256xf32, #tpu.memory_space<vmem>>, vector<1x256xf32>
    %48 = vector.broadcast %47 : vector<1x256xf32> to vector<8x256xf32>
    %49 = arith.addf %46, %48 : vector<8x256xf32>
    %50 = arith.truncf %49 : vector<8x256xf32> to vector<8x256xbf16>
    %c0_24 = arith.constant 0 : index
    %c0_25 = arith.constant 0 : index
    %51 = vector.load %arg10[%c0_24, %c0_25] : memref<256x512xbf16, #tpu.memory_space<vmem>>, vector<256x512xbf16>
    %cst_26 = arith.constant dense<0.000000e+00> : vector<8x512xf32>
    %52 = tpu.matmul %50, %51, %cst_26 {dimension_numbers = #tpu.dot_dimension_numbers<[1], [0], [0], [1], [0, 0, 1, 1], [], []>} : vector<8x256xbf16>, vector<256x512xbf16>, vector<8x512xf32> -> vector<8x512xf32>
    %c0_27 = arith.constant 0 : index
    %c0_28 = arith.constant 0 : index
    %53 = vector.load %arg11[%c0_27, %c0_28] : memref<1x128xf32, #tpu.memory_space<vmem>>, vector<1x128xf32>
    %54 = vector.extract_strided_slice %52 {offsets = [0, 0], sizes = [2, 128], strides = [1, 1]} : vector<8x512xf32> to vector<2x128xf32>
    %55 = vector.broadcast %53 : vector<1x128xf32> to vector<2x128xf32>
    %56 = arith.addf %55, %54 : vector<2x128xf32>
    %57 = vector.extract_strided_slice %52 {offsets = [2, 128], sizes = [2, 128], strides = [1, 1]} : vector<8x512xf32> to vector<2x128xf32>
    %58 = arith.addf %56, %57 : vector<2x128xf32>
    %59 = vector.extract_strided_slice %52 {offsets = [4, 256], sizes = [2, 128], strides = [1, 1]} : vector<8x512xf32> to vector<2x128xf32>
    %60 = arith.addf %58, %59 : vector<2x128xf32>
    %61 = vector.extract_strided_slice %52 {offsets = [6, 384], sizes = [2, 128], strides = [1, 1]} : vector<8x512xf32> to vector<2x128xf32>
    %62 = arith.addf %60, %61 : vector<2x128xf32>
    %cst_29 = arith.constant 0.000000e+00 : f32
    %63 = vector.broadcast %cst_29 : f32 to vector<2x128xf32>
    %64 = arith.maximumf %62, %63 : vector<2x128xf32>
    %65 = arith.truncf %64 : vector<2x128xf32> to vector<2x128xbf16>
    %c0_30 = arith.constant 0 : index
    %c0_31 = arith.constant 0 : index
    %66 = vector.load %arg12[%c0_30, %c0_31] : memref<128x64xbf16, #tpu.memory_space<vmem>>, vector<128x64xbf16>
    %cst_32 = arith.constant dense<0.000000e+00> : vector<2x64xf32>
    %67 = tpu.matmul %65, %66, %cst_32 {dimension_numbers = #tpu.dot_dimension_numbers<[1], [0], [0], [1], [0, 0, 1, 1], [], []>} : vector<2x128xbf16>, vector<128x64xbf16>, vector<2x64xf32> -> vector<2x64xf32>
    %c0_33 = arith.constant 0 : index
    %c0_34 = arith.constant 0 : index
    %68 = vector.load %arg13[%c0_33, %c0_34] : memref<1x64xf32, #tpu.memory_space<vmem>>, vector<1x64xf32>
    %69 = vector.broadcast %68 : vector<1x64xf32> to vector<2x64xf32>
    %70 = arith.addf %67, %69 : vector<2x64xf32>
    %71 = arith.truncf %70 : vector<2x64xf32> to vector<2x64xbf16>
    %c0_35 = arith.constant 0 : index
    %c0_36 = arith.constant 0 : index
    %72 = vector.load %arg14[%c0_35, %c0_36] : memref<64x96xbf16, #tpu.memory_space<vmem>>, vector<64x96xbf16>
    %cst_37 = arith.constant dense<0.000000e+00> : vector<2x96xf32>
    %73 = tpu.matmul %71, %72, %cst_37 {dimension_numbers = #tpu.dot_dimension_numbers<[1], [0], [0], [1], [0, 0, 1, 1], [], []>} : vector<2x64xbf16>, vector<64x96xbf16>, vector<2x96xf32> -> vector<2x96xf32>
    %c0_38 = arith.constant 0 : index
    %c0_39 = arith.constant 0 : index
    %74 = vector.load %arg15[%c0_38, %c0_39] : memref<1x96xf32, #tpu.memory_space<vmem>>, vector<1x96xf32>
    %75 = vector.broadcast %74 : vector<1x96xf32> to vector<2x96xf32>
    %76 = arith.addf %73, %75 : vector<2x96xf32>
    %cst_40 = arith.constant 0.000000e+00 : f32
    %77 = vector.broadcast %cst_40 : f32 to vector<2x96xf32>
    %78 = arith.maximumf %76, %77 : vector<2x96xf32>
    %79 = arith.truncf %78 : vector<2x96xf32> to vector<2x96xbf16>
    %c0_41 = arith.constant 0 : index
    %c0_42 = arith.constant 0 : index
    %80 = vector.load %arg16[%c0_41, %c0_42] : memref<96x128xbf16, #tpu.memory_space<vmem>>, vector<96x128xbf16>
    %cst_43 = arith.constant dense<0.000000e+00> : vector<2x128xf32>
    %81 = tpu.matmul %79, %80, %cst_43 {dimension_numbers = #tpu.dot_dimension_numbers<[1], [0], [0], [1], [0, 0, 1, 1], [], []>} : vector<2x96xbf16>, vector<96x128xbf16>, vector<2x128xf32> -> vector<2x128xf32>
    %c0_44 = arith.constant 0 : index
    %c0_45 = arith.constant 0 : index
    %82 = vector.load %arg17[%c0_44, %c0_45] : memref<1x128xf32, #tpu.memory_space<vmem>>, vector<1x128xf32>
    %83 = vector.broadcast %82 : vector<1x128xf32> to vector<2x128xf32>
    %84 = arith.addf %81, %83 : vector<2x128xf32>
    %85 = tpu.iota {dimensions = array<i32: 1>} : vector<2x128xi32>
    %c7_i32 = arith.constant 7 : i32
    %86 = vector.broadcast %c7_i32 : i32 to vector<2x128xi32>
    %87 = arith.cmpi sge, %85, %86 : vector<2x128xi32>
    %c14_i32 = arith.constant 14 : i32
    %88 = vector.broadcast %c14_i32 : i32 to vector<2x128xi32>
    %89 = arith.cmpi slt, %85, %88 : vector<2x128xi32>
    %90 = arith.andi %87, %89 : vector<2x128xi1>
    %91 = arith.negf %84 : vector<2x128xf32>
    %92 = math.exp %91 : vector<2x128xf32>
    %cst_46 = arith.constant 1.000000e+00 : f32
    %93 = vector.broadcast %cst_46 : f32 to vector<2x128xf32>
    %94 = arith.addf %93, %92 : vector<2x128xf32>
    %95 = arith.divf %93, %94 : vector<2x128xf32>
    %96 = arith.select %90, %95, %84 : vector<2x128xi1>, vector<2x128xf32>
    %c0_47 = arith.constant 0 : index
    %c0_48 = arith.constant 0 : index
    %97 = vector.load %arg18[%c0_47, %c0_48] : memref<2x128xf32, #tpu.memory_space<vmem>>, vector<2x128xf32>
    tpu.vector_store %arg18[%c0_47, %c0_48], %96 {strides = array<i32>} : memref<2x128xf32, #tpu.memory_space<vmem>>, vector<2x128xf32>,
    return
  }
  func.func @transform_0(%arg0: i32) -> (i32, i32) {
    %c0_i32 = arith.constant 0 : i32
    %c0_i32_0 = arith.constant 0 : i32
    %c0_i32_1 = arith.constant 0 : i32
    return %c0_i32, %c0_i32_0 : i32, i32
  }
  func.func @transform_1(%arg0: i32) -> (i32, i32) {
    %c0_i32 = arith.constant 0 : i32
    %c0_i32_0 = arith.constant 0 : i32
    %c0_i32_1 = arith.constant 0 : i32
    return %c0_i32, %c0_i32_0 : i32, i32
  }
  func.func @transform_2(%arg0: i32) -> (i32, i32) {
    %c0_i32 = arith.constant 0 : i32
    %c0_i32_0 = arith.constant 0 : i32
    %c0_i32_1 = arith.constant 0 : i32
    return %c0_i32, %c0_i32_0 : i32, i32
  }
  func.func @transform_3(%arg0: i32) -> (i32, i32) {
    %c0_i32 = arith.constant 0 : i32
    %c0_i32_0 = arith.constant 0 : i32
    %c0_i32_1 = arith.constant 0 : i32
    return %c0_i32, %c0_i32_0 : i32, i32
  }
  func.func @transform_4(%arg0: i32) -> (i32, i32) {
    %c0_i32 = arith.constant 0 : i32
    %c0_i32_0 = arith.constant 0 : i32
    %c0_i32_1 = arith.constant 0 : i32
    return %c0_i32, %c0_i32_0 : i32, i32
  }
  func.func @transform_5(%arg0: i32) -> (i32, i32) {
    %c0_i32 = arith.constant 0 : i32
    %c0_i32_0 = arith.constant 0 : i32
    %c0_i32_1 = arith.constant 0 : i32
    return %c0_i32, %c0_i32_0 : i32, i32
  }
  func.func @transform_6(%arg0: i32) -> (i32, i32) {
    %c0_i32 = arith.constant 0 : i32
    %c0_i32_0 = arith.constant 0 : i32
    %c0_i32_1 = arith.constant 0 : i32
    return %c0_i32, %c0_i32_0 : i32, i32
  }
  func.func @transform_7(%arg0: i32) -> (i32, i32) {
    %c0_i32 = arith.constant 0 : i32
    %c0_i32_0 = arith.constant 0 : i32
    %c0_i32_1 = arith.constant 0 : i32
    return %c0_i32, %c0_i32_0 : i32, i32
  }
  func.func @transform_8(%arg0: i32) -> (i32, i32) {
    %c0_i32 = arith.constant 0 : i32
    %c0_i32_0 = arith.constant 0 : i32
    %c0_i32_1 = arith.constant 0 : i32
    return %c0_i32, %c0_i32_0 : i32, i32
  }
  func.func @transform_9(%arg0: i32) -> (i32, i32) {
    %c0_i32 = arith.constant 0 : i32
    %c0_i32_0 = arith.constant 0 : i32
    %c0_i32_1 = arith.constant 0 : i32
    return %c0_i32, %c0_i32_0 : i32, i32
  }
  func.func @transform_10(%arg0: i32) -> (i32, i32) {
    %c0_i32 = arith.constant 0 : i32
    %c0_i32_0 = arith.constant 0 : i32
    %c0_i32_1 = arith.constant 0 : i32
    return %c0_i32, %c0_i32_0 : i32, i32
  }
  func.func @transform_11(%arg0: i32) -> (i32, i32) {
    %c0_i32 = arith.constant 0 : i32
    %c0_i32_0 = arith.constant 0 : i32
    %c0_i32_1 = arith.constant 0 : i32
    return %c0_i32, %c0_i32_0 : i32, i32
  }
  func.func @transform_12(%arg0: i32) -> (i32, i32) {
    %c0_i32 = arith.constant 0 : i32
    %c0_i32_0 = arith.constant 0 : i32
    %c0_i32_1 = arith.constant 0 : i32
    return %c0_i32, %c0_i32_0 : i32, i32
  }
  func.func @transform_13(%arg0: i32) -> (i32, i32) {
    %c0_i32 = arith.constant 0 : i32
    %c0_i32_0 = arith.constant 0 : i32
    %c0_i32_1 = arith.constant 0 : i32
    return %c0_i32, %c0_i32_0 : i32, i32
  }
  func.func @transform_14(%arg0: i32) -> (i32, i32) {
    %c0_i32 = arith.constant 0 : i32
    %c0_i32_0 = arith.constant 0 : i32
    %c0_i32_1 = arith.constant 0 : i32
    return %c0_i32, %c0_i32_0 : i32, i32
  }
  func.func @transform_15(%arg0: i32) -> (i32, i32) {
    %c0_i32 = arith.constant 0 : i32
    %c0_i32_0 = arith.constant 0 : i32
    %c0_i32_1 = arith.constant 0 : i32
    return %c0_i32, %c0_i32_0 : i32, i32
  }
  func.func @transform_16(%arg0: i32) -> (i32, i32) {
    %c0_i32 = arith.constant 0 : i32
    %c0_i32_0 = arith.constant 0 : i32
    %c0_i32_1 = arith.constant 0 : i32
    return %c0_i32, %c0_i32_0 : i32, i32
  }
  func.func @transform_17(%arg0: i32) -> (i32, i32) {
    %c0_i32 = arith.constant 0 : i32
    %c0_i32_0 = arith.constant 0 : i32
    %c0_i32_1 = arith.constant 0 : i32
    return %c0_i32, %c0_i32_0 : i32, i32
  }
}

</mosaic_0001>

<bundles_post_ra>
// kernel: update_operator_forward.1
= control target key start
LH: loop header
LB: loop body
LE: loop exit
PB: predicated region body
PF: predicated region fallthrough
CT: control target
= control target key end

     0   :  { %s3966_s0 = inlined_call_operand.vmem [shape: f32[8,128], index: 0, kind: input, shape index: {}]   ;;  %s3967_s1 = inlined_call_operand.vmem [shape: f32[8,64], index: 1, kind: input, shape index: {}]   ;;  %s3968_s2 = inlined_call_operand.vmem [shape: f32[64,256], index: 2, kind: input, shape index: {}]   ;;  %s3969_s3 = inlined_call_operand.hbm [shape: bf16[384,256], index: 3, kind: input, shape index: {}]   ;;  %s3970_s4 = inlined_call_operand.vmem [shape: f32[1,256], index: 4, kind: input, shape index: {}]   ;;  %s3971_s5 = inlined_call_operand.hbm [shape: bf16[256,768], index: 5, kind: input, shape index: {}]   ;;  %s3972_s6 = inlined_call_operand.vmem [shape: f32[1,768], index: 6, kind: input, shape index: {}]   ;;  %s3973_s7 = inlined_call_operand.hbm [shape: bf16[256,256], index: 7, kind: input, shape index: {}]   ;;  %s3974_s8 = inlined_call_operand.hbm [shape: f32[1,256], index: 8, kind: input, shape index: {}]   ;;  %s3975_s9 = inlined_call_operand.hbm [shape: bf16[256,512], index: 9, kind: input, shape index: {}]   ;;  %s3976_s10 = inlined_call_operand.hbm [shape: f32[1,128], index: 10, kind: input, shape index: {}]   ;;  %s3977_s11 = inlined_call_operand.vmem [shape: bf16[128,64], index: 11, kind: input, shape index: {}]   ;;  %s3978_s12 = inlined_call_operand.hbm [shape: f32[1,64], index: 12, kind: input, shape index: {}]   ;;  %s3979_s13 = inlined_call_operand.hbm [shape: bf16[64,96], index: 13, kind: input, shape index: {}]   ;;  %s3980_s14 = inlined_call_operand.hbm [shape: f32[1,96], index: 14, kind: input, shape index: {}]   ;;  %s3981_s15 = inlined_call_operand.hbm [shape: bf16[96,128], index: 15, kind: input, shape index: {}]   ;;  %s3982_s16 = inlined_call_operand.hbm [shape: f32[1,128], index: 16, kind: input, shape index: {}]   ;;  %s3983_s17 = inlined_call_operand.vmem [shape: f32[2,128], index: 17, kind: output, shape index: {}]  }
   0x1   :  { %3984 = sst [smem:[#allocation25_spill]] %s3966_s0 }
   0x2   :  { %3985 = sst [smem:[#allocation26_spill]] %s3967_s1 }
   0x3   :  { %22 = vsyncpa [#allocation3], 0 }
   0x4   :  { %23 = vsyncpa [#allocation5], 0 }
   0x5   :  { %24 = vsyncpa [#allocation8], 0 }
   0x6   :  { %25 = vsyncpa [#allocation11], 0 }
   0x7   :  { %26 = vsyncpa [#allocation14], 0 }
   0x8   :  { %27 = vsyncpa [#allocation17], 0  ;;  %s3577_s24 = smov [#allocation4]  }
   0x9   :  { %s53_s25 = sshll.u32 %s3577_s24, 4  ;;  %s54_s25 = int_to_ptr.vmem [resolvable:$true] %s53_s25 }
   0xa   :  { %s3353_s26 = scalar_lea.vmem %s54_s25, 12288  ;;  %p3358_p1 = scmp.lt.s32.totalorder %s54_s25, %s54_s25 }
   0xb   :  { %p3354_p0 = scmp.ne.s32.totalorder %s54_s25, %s3353_s26  ;;  %p3359_p2 = scmp.lt.s32.totalorder %s3353_s26, %s3353_s26 }
   0xd   :  { %p3360_p3 = por %p3359_p2, %p3358_p1 }
   0xf   :  { %p3361_p4 = pnand %p3360_p3, %p3354_p0 }
  0x11   :  { %3364 = shalt.err (!%p3361_p4)
}
  0x12   :  { %s3578_s27 = smov 384   ;;  %s3579_s28 = smov 24  }
  0x13   :  { %59 = dma.hbm_to_vmem [thread:$0]  %s3971_s5, 12288, %s54_s25, [#allocation5], %s3578_s27, %s3578_s27, %s3579_s28  }
  0x14   :  { %s3580_s30 = smov [#allocation7]   ;;  %s3581_s19 = smov [#allocation10]  }
  0x15   :  { %s80_s18 = sshll.u32 %s3580_s30, 4  ;;  %s102_s1 = sshll.u32 %s3581_s19, 4  ;;  %s81_s18 = int_to_ptr.vmem [resolvable:$true] %s80_s18  ;;  %s103_s1 = int_to_ptr.vmem [resolvable:$true] %s102_s1 }
  0x16   :  { %s3373_s20 = scalar_lea.vmem %s81_s18, 32  ;;  %p3378_p6 = scmp.lt.s32.totalorder %s81_s18, %s81_s18 }
  0x17   :  { %p3374_p5 = scmp.ne.s32.totalorder %s81_s18, %s3373_s20  ;;  %p3379_p7 = scmp.lt.s32.totalorder %s3373_s20, %s3373_s20 }
  0x19   :  { %p3380_p8 = por %p3379_p7, %p3378_p6 }
  0x1b   :  { %p3381_p9 = pnand %p3380_p8, %p3374_p5 }
  0x1d   :  { %3384 = shalt.err (!%p3381_p9)
}
  0x1e   :  { %83 = dma.hbm_to_vmem [thread:$0]  %s3974_s8, 32, %s81_s18, [#allocation8]  }
  0x1f   :  { %s3393_s23 = scalar_lea.vmem %s103_s1, 16  ;;  %s3397_s5 = scalar_lea.vmem %s103_s1, 32 }
  0x20   :  { %p3394_p10 = scmp.ne.s32.totalorder %s103_s1, %s3393_s23  ;;  %p3398_p11 = scmp.lt.s32.totalorder %s103_s1, %s103_s1 }
  0x21   :  { %p3399_p12 = scmp.lt.s32.totalorder %s3397_s5, %s3393_s23 }
  0x23   :  { %p3400_p13 = por %p3399_p12, %p3398_p11 }
  0x25   :  { %p3401_p0 = pnand %p3400_p13, %p3394_p10 }
  0x27   :  { %3404 = shalt.err (!%p3401_p0)
}
  0x28   :  { %105 = dma.hbm_to_vmem [thread:$0]  %s3976_s10, 16, %s103_s1, [#allocation11]  }
  0x29   :  { %s3582_s26 = smov [#allocation13]  }
  0x2a   :  { %s123_s27 = sshll.u32 %s3582_s26, 4  ;;  %s124_s27 = int_to_ptr.vmem [resolvable:$true] %s123_s27 }
  0x2b   :  { %s3413_s28 = scalar_lea.vmem %s124_s27, 512  ;;  %p3418_p2 = scmp.lt.s32.totalorder %s124_s27, %s124_s27 }
  0x2c   :  { %p3414_p1 = scmp.ne.s32.totalorder %s124_s27, %s3413_s28  ;;  %p3419_p3 = scmp.lt.s32.totalorder %s3413_s28, %s3413_s28 }
  0x2e   :  { %p3420_p4 = por %p3419_p3, %p3418_p2 }
  0x30   :  { %p3421_p5 = pnand %p3420_p4, %p3414_p1 }
  0x32   :  { %3424 = shalt.err (!%p3421_p5)
}
  0x33   :  { %s3583_s8 = smov 64   ;;  %s3584_s29 = smov 4  }
  0x34   :  { %129 = dma.hbm_to_vmem [thread:$0]  %s3979_s13, 512, %s124_s27, [#allocation14], %s3583_s8, %s3583_s8, %s3584_s29  }
  0x35   :  { %s3585_s18 = smov [#allocation16]   ;;  %s3586_s20 = smov [#allocation2]  }
  0x36   :  { %s145_s19 = sshll.u32 %s3585_s18, 4  ;;  %s39_s10 = sshll.u32 %s3586_s20, 4  ;;  %s146_s19 = int_to_ptr.vmem [resolvable:$true] %s145_s19  ;;  %s40_s10 = int_to_ptr.vmem [resolvable:$true] %s39_s10 }
  0x37   :  { %s3433_s1 = scalar_lea.vmem %s146_s19, 768  ;;  %p3438_p7 = scmp.lt.s32.totalorder %s146_s19, %s146_s19 }
  0x38   :  { %p3434_p6 = scmp.ne.s32.totalorder %s146_s19, %s3433_s1  ;;  %p3439_p8 = scmp.lt.s32.totalorder %s3433_s1, %s3433_s1 }
  0x3a   :  { %p3440_p9 = por %p3439_p8, %p3438_p7 }
  0x3c   :  { %p3441_p10 = pnand %p3440_p9, %p3434_p6 }
  0x3e   :  { %3444 = shalt.err (!%p3441_p10)
}
  0x3f   :  { %151 = dma.hbm_to_vmem [thread:$0]  %s3981_s15, 768, %s146_s19, [#allocation17], %s3583_s8, %s3583_s8, %s3584_s29  }
  0x40   :  { %s3453_s23 = scalar_lea.vmem %s40_s10, 6144  ;;  %p3458_p12 = scmp.lt.s32.totalorder %s40_s10, %s40_s10 }
  0x41   :  { %p3454_p11 = scmp.ne.s32.totalorder %s40_s10, %s3453_s23  ;;  %p3459_p13 = scmp.lt.s32.totalorder %s3453_s23, %s3453_s23 }
  0x43   :  { %p3460_p0 = por %p3459_p13, %p3458_p12 }
  0x45   :  { %p3461_p1 = pnand %p3460_p0, %p3454_p11 }
  0x47   :  { %3464 = shalt.err (!%p3461_p1)
}
  0x48   :  { %s3587_s13 = smov 128   ;;  %s3588_s5 = smov 8  }
  0x49   :  { %45 = dma.hbm_to_vmem [thread:$0]  %s3969_s3, 6144, %s40_s10, [#allocation3], %s3587_s13, %s3587_s13, %s3588_s5  }
  0x4a   :  { %s3589_s26 = smov [#allocation6]   ;;  %s3590_s28 = smov [#allocation9]  }
  0x4b   :  { %s67_s27 = sshll.u32 %s3589_s26, 4  ;;  %s89_s0 = sshll.u32 %s3590_s28, 4  ;;  %s68_s27 = int_to_ptr.vmem [resolvable:$true] %s67_s27  ;;  %s90_s0 = int_to_ptr.vmem [resolvable:$true] %s89_s0 }
  0x4c   :  { %s3473_s15 = scalar_lea.vmem %s68_s27, 4096  ;;  %p3478_p3 = scmp.lt.s32.totalorder %s68_s27, %s68_s27 }
  0x4d   :  { %p3474_p2 = scmp.ne.s32.totalorder %s68_s27, %s3473_s15  ;;  %p3479_p4 = scmp.lt.s32.totalorder %s3473_s15, %s3473_s15 }
  0x4f   :  { %p3480_p5 = por %p3479_p4, %p3478_p3 }
  0x51   :  { %p3481_p6 = pnand %p3480_p5, %p3474_p2 }
  0x53   :  { %3484 = shalt.err (!%p3481_p6)
}
  0x54   :  { %73 = dma.hbm_to_vmem [thread:$0]  %s3973_s7, 4096, %s68_s27, [#allocation5], %s3587_s13, %s3587_s13, %s3588_s5  }
  0x55   :  { %s3493_s30 = scalar_lea.vmem %s90_s0, 8192  ;;  %p3498_p8 = scmp.lt.s32.totalorder %s90_s0, %s90_s0 }
  0x56   :  { %p3494_p7 = scmp.ne.s32.totalorder %s90_s0, %s3493_s30  ;;  %p3499_p9 = scmp.lt.s32.totalorder %s3493_s30, %s3493_s30 }
  0x58   :  { %p3500_p10 = por %p3499_p9, %p3498_p8 }
  0x5a   :  { %p3501_p11 = pnand %p3500_p10, %p3494_p7 }
  0x5c   :  { %3504 = shalt.err (!%p3501_p11)
}
  0x5d   :  { %s3591_s3 = smov 256   ;;  %s3592_s18 = smov 16  }
  0x5e   :  { %95 = dma.hbm_to_vmem [thread:$0]  %s3975_s9, 8192, %s90_s0, [#allocation8], %s3591_s3, %s3591_s3, %s3592_s18  }
  0x5f   :  { %s3593_s10 = smov [#allocation12]   ;;  %s3594_s21 = smov [#allocation15]  }
  0x60   :  { %s114_s1 = sshll.u32 %s3593_s10, 4  ;;  %s136_s22 = sshll.u32 %s3594_s21, 4  ;;  %s115_s1 = int_to_ptr.vmem [resolvable:$true] %s114_s1  ;;  %s137_s22 = int_to_ptr.vmem [resolvable:$true] %s136_s22 }
  0x61   :  { %s3513_s7 = scalar_lea.vmem %s115_s1, 16  ;;  %s3517_s23 = scalar_lea.vmem %s115_s1, 32 }
  0x62   :  { %p3514_p12 = scmp.ne.s32.totalorder %s115_s1, %s3513_s7  ;;  %p3518_p13 = scmp.lt.s32.totalorder %s115_s1, %s115_s1 }
  0x63   :  { %p3519_p0 = scmp.lt.s32.totalorder %s3517_s23, %s3513_s7 }
  0x65   :  { %p3520_p1 = por %p3519_p0, %p3518_p13 }
  0x67   :  { %p3521_p2 = pnand %p3520_p1, %p3514_p12 }
  0x69   :  { %3524 = shalt.err (!%p3521_p2)
}
  0x6a   :  { %117 = dma.hbm_to_vmem [thread:$0]  %s3978_s12, 16, %s115_s1, [#allocation11]  }
  0x6b   :  { %s3533_s24 = scalar_lea.vmem %s137_s22, 16  ;;  %s3537_s9 = scalar_lea.vmem %s137_s22, 32 }
  0x6c   :  { %p3534_p3 = scmp.ne.s32.totalorder %s137_s22, %s3533_s24  ;;  %p3538_p4 = scmp.lt.s32.totalorder %s137_s22, %s137_s22 }
  0x6d   :  { %p3539_p5 = scmp.lt.s32.totalorder %s3537_s9, %s3533_s24 }
  0x6f   :  { %p3540_p6 = por %p3539_p5, %p3538_p4 }
  0x71   :  { %p3541_p7 = pnand %p3540_p6, %p3534_p3 }
  0x73   :  { %3544 = shalt.err (!%p3541_p7)
}
  0x74   :  { %139 = dma.hbm_to_vmem [thread:$0]  %s3980_s14, 16, %s137_s22, [#allocation14]  }
  0x75   :  { %s3595_s27 = smov [#allocation18]  }
  0x76   :  { %s158_s28 = sshll.u32 %s3595_s27, 4  ;;  %s159_s28 = int_to_ptr.vmem [resolvable:$true] %s158_s28 }
  0x77   :  { %s3553_s0 = scalar_lea.vmem %s159_s28, 16  ;;  %s3557_s15 = scalar_lea.vmem %s159_s28, 32 }
  0x78   :  { %p3554_p8 = scmp.ne.s32.totalorder %s159_s28, %s3553_s0  ;;  %p3558_p9 = scmp.lt.s32.totalorder %s159_s28, %s159_s28 }
  0x79   :  { %p3559_p10 = scmp.lt.s32.totalorder %s3557_s15, %s3553_s0 }
  0x7b   :  { %p3560_p11 = por %p3559_p10, %p3558_p9 }
  0x7d   :  { %p3561_p12 = pnand %p3560_p11, %p3554_p8 }
  0x7f   :  { %3564 = shalt.err (!%p3561_p12)
}
  0x80   :  { %161 = dma.hbm_to_vmem [thread:$0]  %s3982_s16, 16, %s159_s28, [#allocation17]  }
  0x81   :  { %3565 = dma.done.wait [#allocation3], 6144  }
  0x82   :  { %3566 = vsyncadd [#allocation3], 4294961152 }
  0x83   :  { %3567 = dma.done.wait [#allocation5], 16384  }
  0x84   :  { %3568 = vsyncadd [#allocation5], 4294950912 }
  0x85   :  { %3569 = dma.done.wait [#allocation8], 8224  }
  0x86   :  { %3570 = vsyncadd [#allocation8], 4294959072 }
  0x87   :  { %3571 = dma.done.wait [#allocation11], 32  }
  0x88   :  { %3572 = vsyncadd [#allocation11], 4294967264 }
  0x89   :  { %3573 = dma.done.wait [#allocation14], 528  }
  0x8a   :  { %3574 = vsyncadd [#allocation14], 4294966768 }
  0x8b   :  { %3575 = dma.done.wait [#allocation17], 784  }
  0x8c   :  { %3576 = vsyncadd [#allocation17], 4294966512  ;;  %v3596_v0 = vmov 0   ;;  %v2957_v1 = vld [vmem:[#allocation2 + $0x74] ss:$8 sps:$4 sm:$0xff]   ;;  %s3986_s29 = sld [smem:[#allocation25_spill]]  ;;  %v259_v61 = vlaneseq }
  0x8d   :  { %582 = vmatprep.mubr.bf16.mxu1 %v3596_v0  ;;  %v2959_v2 = vld [vmem:[#allocation2 + $0x70] ss:$8 sps:$4 sm:$0xff]   ;;  %509 = vmatprep.subr.bf16.mxu0 %v2957_v1  ;;  %v2960_v3 = vld [vmem:[#allocation2 + $0x64] ss:$8 sps:$4 sm:$0xff]   ;;  %v2962_v4 = vld [vmem:[#allocation2 + $0x60] ss:$8 sps:$4 sm:$0xff]  }
  0x8e   :  { %510 = vmatpush1.bf16.msra.mxu0 %v2959_v2  ;;  %v2963_v5 = vld [vmem:[#allocation2 + $0x54] ss:$8 sps:$4 sm:$0xff]   ;;  %v2965_v6 = vld [vmem:[#allocation2 + $0x50] ss:$8 sps:$4 sm:$0xff]   ;;  %v2966_v7 = vld [vmem:[#allocation2 + $0x44] ss:$8 sps:$4 sm:$0xff]  }
  0x8f   :  { %511 = vmatprep.subr.bf16.mxu0 %v2960_v3  ;;  %v2968_v8 = vld [vmem:[#allocation2 + $0x40] ss:$8 sps:$4 sm:$0xff]   ;;  %v2980_v9 = vld [vmem:[#allocation2 + $0x174] ss:$8 sps:$4 sm:$0xff]   ;;  %v2983_v10 = vld [vmem:[#allocation2 + $0x170] ss:$8 sps:$4 sm:$0xff]  }
  0x90   :  { %v2969_v11 = vld [vmem:[#allocation2 + $0x34] ss:$8 sps:$4 sm:$0xff]   ;;  %550 = vmatprep.subr.bf16.mxu1 %v2980_v9  ;;  %v2986_v12 = vld [vmem:[#allocation2 + $0x164] ss:$8 sps:$4 sm:$0xff]   ;;  %v2989_v13 = vld [vmem:[#allocation2 + $0x160] ss:$8 sps:$4 sm:$0xff]  }
  0x91   :  { %551 = vmatpush1.bf16.msra.mxu1 %v2983_v10  ;;  %v2971_v14 = vld [vmem:[#allocation2 + $0x30] ss:$8 sps:$4 sm:$0xff]   ;;  %v2972_v15 = vld [vmem:[#allocation2 + $0x24] ss:$8 sps:$4 sm:$0xff]   ;;  %v2992_v16 = vld [vmem:[#allocation2 + $0x154] ss:$8 sps:$4 sm:$0xff]  }
  0x92   :  { %512 = vmatpush1.bf16.msra.mxu0 %v2962_v4  ;;  %552 = vmatprep.subr.bf16.mxu1 %v2986_v12  ;;  %v2995_v17 = vld [vmem:[#allocation2 + $0x150] ss:$8 sps:$4 sm:$0xff]   ;;  %v2974_v18 = vld [vmem:[#allocation2 + $0x20] ss:$8 sps:$4 sm:$0xff]   ;;  %v2998_v19 = vld [vmem:[#allocation2 + $0x144] ss:$8 sps:$4 sm:$0xff]  }
  0x93   :  { %513 = vmatprep.subr.bf16.mxu0 %v2963_v5  ;;  %v2975_v20 = vld [vmem:[#allocation2 + $0x14] ss:$8 sps:$4 sm:$0xff]   ;;  %v2977_v21 = vld [vmem:[#allocation2 + $0x10] ss:$8 sps:$4 sm:$0xff]   ;;  %v3001_v22 = vld [vmem:[#allocation2 + $0x140] ss:$8 sps:$4 sm:$0xff]  }
  0x94   :  { %v3004_v23 = vld [vmem:[#allocation2 + $0x134] ss:$8 sps:$4 sm:$0xff]   ;;  %v2978_v24 = vld [vmem:[#allocation2 + $0x4] ss:$8 sps:$4 sm:$0xff]   ;;  %v3007_v25 = vld [vmem:[#allocation2 + $0x130] ss:$8 sps:$4 sm:$0xff]  }
  0x95   :  { %553 = vmatpush1.bf16.msra.mxu1 %v2989_v13  ;;  %v2982_v26 = vld [vmem:[#allocation2] ss:$8 sps:$4 sm:$0xff]   ;;  %v3010_v27 = vld [vmem:[#allocation2 + $0x124] ss:$8 sps:$4 sm:$0xff]   ;;  %v2984_v28 = vld [vmem:[#allocation2 + $0xf4] ss:$8 sps:$4 sm:$0xff]  }
  0x96   :  { %514 = vmatpush1.bf16.msra.mxu0 %v2965_v6  ;;  %554 = vmatprep.subr.bf16.mxu1 %v2992_v16  ;;  %v2988_v29 = vld [vmem:[#allocation2 + $0xf0] ss:$8 sps:$4 sm:$0xff]   ;;  %v3013_v30 = vld [vmem:[#allocation2 + $0x120] ss:$8 sps:$4 sm:$0xff]   ;;  %v3016_v31 = vld [vmem:[#allocation2 + $0x114] ss:$8 sps:$4 sm:$0xff]  }
  0x97   :  { %515 = vmatprep.subr.bf16.mxu0 %v2966_v7  ;;  %v3726_v32 = vld [vmem:[%s3986_s29] sm:$0xff]  ;;  %v3019_v36 = vld [vmem:[#allocation2 + $0x110] ss:$8 sps:$4 sm:$0xff]   ;;  %v2996_v38 = vld [vmem:[#allocation2 + $0xd4] ss:$8 sps:$4 sm:$0xff]   ;;  %vm204_vm0 = vcmask 1045504  }
  0x98   :  { %v2990_v33 = vld [vmem:[#allocation2 + $0xe4] ss:$8 sps:$4 sm:$0xff]   ;;  %v207_v34 = vpack.c.bf16 %v3726_v32, %v3726_v32  ;;  %v2994_v35 = vld [vmem:[#allocation2 + $0xe0] ss:$8 sps:$4 sm:$0xff]   ;;  %v202_v39 = vrot.slane %v3726_v32, 2  ;;  %vm2644_vm1 = vmpackc.low %vm204_vm0, %vm204_vm0  ;;  %vm200_vm2 = vcmask 1041408  }
  0x99   :  { %555 = vmatpush1.bf16.msra.mxu1 %v2995_v17  ;;  %v3022_v37 = vld [vmem:[#allocation2 + $0x104] ss:$8 sps:$4 sm:$0xff]   ;;  %v3000_v40 = vld [vmem:[#allocation2 + $0xd0] ss:$8 sps:$4 sm:$0xff]   ;;  %v3025_v41 = vld [vmem:[#allocation2 + $0x100] ss:$8 sps:$4 sm:$0xff]  }
  0x9a   :  { %516 = vmatpush1.bf16.msra.mxu0 %v2968_v8  ;;  %556 = vmatprep.subr.bf16.mxu1 %v2998_v19  ;;  %v3031_v42 = vld [vmem:[#allocation4 + $0x154] ss:$24 sps:$4 sm:$0xff]   ;;  %v2645_v44 = vpack.c.bf16 %v202_v39, %v202_v39  ;;  %v3006_v45 = vld [vmem:[#allocation2 + $0xc0] ss:$8 sps:$4 sm:$0xff]   ;;  %v3037_v47 = vld [vmem:[#allocation4 + $0x124] ss:$24 sps:$4 sm:$0xff]  }
  0x9b   :  { %517 = vmatprep.subr.bf16.mxu0 %v2969_v11  ;;  %541 = vmatprep.mubr.bf16.mxu0 %v207_v34  ;;  %v3002_v43 = vld [vmem:[#allocation2 + $0xc4] ss:$8 sps:$4 sm:$0xff]   ;;  %v3029_v46 = vld [vmem:[#allocation4 + $0x150] ss:$24 sps:$4 sm:$0xff]   ;;  %v3008_v48 = vld [vmem:[#allocation2 + $0xb4] ss:$8 sps:$4 sm:$0xff]  }
  0x9c   :  { %v3012_v49 = vld [vmem:[#allocation2 + $0xb0] ss:$8 sps:$4 sm:$0xff]   ;;  %v3043_v51 = vld [vmem:[#allocation4 + $0xf4] ss:$24 sps:$4 sm:$0xff]   ;;  %v3018_v53 = vld [vmem:[#allocation2 + $0xa0] ss:$8 sps:$4 sm:$0xff]  }
  0x9d   :  { %557 = vmatpush1.bf16.msra.mxu1 %v3001_v22  ;;  %v3035_v50 = vld [vmem:[#allocation4 + $0x120] ss:$24 sps:$4 sm:$0xff]   ;;  %v3014_v52 = vld [vmem:[#allocation2 + $0xa4] ss:$8 sps:$4 sm:$0xff]   ;;  %v3041_v54 = vld [vmem:[#allocation4 + $0xf0] ss:$24 sps:$4 sm:$0xff]  }
  0x9e   :  { %518 = vmatpush1.bf16.msra.mxu0 %v2971_v14  ;;  %558 = vmatprep.subr.bf16.mxu1 %v3004_v23  ;;  %v3049_v55 = vld [vmem:[#allocation4 + $0xc4] ss:$24 sps:$4 sm:$0xff]   ;;  %v3024_v57 = vld [vmem:[#allocation2 + $0x90] ss:$8 sps:$4 sm:$0xff]   ;;  %v3055_v59 = vld [vmem:[#allocation4 + $0x94] ss:$24 sps:$4 sm:$0xff]  }
  0x9f   :  { %519 = vmatprep.subr.bf16.mxu0 %v2972_v15  ;;  %v3020_v56 = vld [vmem:[#allocation2 + $0x94] ss:$8 sps:$4 sm:$0xff]   ;;  %v3047_v58 = vld [vmem:[#allocation4 + $0xc0] ss:$24 sps:$4 sm:$0xff]   ;;  %v3026_v60 = vld [vmem:[#allocation2 + $0x84] ss:$8 sps:$4 sm:$0xff]  }
  0xa0   :  { %vm3731_vm3 = vmneg %vm200_vm2  ;;  %v3028_v62 = vld [vmem:[#allocation2 + $0x80] ss:$8 sps:$4 sm:$0xff]   ;;  %v198_v63 = vrot.slane %v3726_v32, 6  ;;  %v3061_v2 = vld [vmem:[#allocation4 + $0x64] ss:$24 sps:$4 sm:$0xff]   ;;  %s3989_s21 = sld [smem:[#allocation26_spill]] }
  0xa1   :  { %559 = vmatpush1.bf16.msra.mxu1 %v3007_v25  ;;  %v3053_v1 = vld [vmem:[#allocation4 + $0x90] ss:$24 sps:$4 sm:$0xff]   ;;  %v3034_v3 = vld [vmem:[#allocation4 + $0x15c] ss:$24 sps:$4 sm:$0xff]   ;;  %vm2641_vm4 = vmpackc.low %vm3731_vm3, %vm3731_vm3  ;;  %vm1431_vm5 = vcmask 523264   ;;  %vm3598_vm6 = vmmov 0  }
  0xa2   :  { %520 = vmatpush1.bf16.msra.mxu0 %v2974_v18  ;;  %560 = vmatprep.subr.bf16.mxu1 %v3010_v27  ;;  %v2642_v4 = vpack.c.bf16 %v198_v63, %v198_v63  ;;  %v3032_v5 = vld [vmem:[#allocation4 + $0x158] ss:$24 sps:$4 sm:$0xff]   ;;  %v3067_v7 = vld [vmem:[#allocation4 + $0x34] ss:$24 sps:$4 sm:$0xff]   ;;  %v3038_v9 = vld [vmem:[#allocation4 + $0x128] ss:$24 sps:$4 sm:$0xff]  }
  0xa3   :  { %521 = vmatprep.subr.bf16.mxu0 %v2975_v20  ;;  %v3059_v6 = vld [vmem:[#allocation4 + $0x60] ss:$24 sps:$4 sm:$0xff]   ;;  %v3040_v8 = vld [vmem:[#allocation4 + $0x12c] ss:$24 sps:$4 sm:$0xff]   ;;  %v3046_v10 = vld [vmem:[#allocation4 + $0xfc] ss:$24 sps:$4 sm:$0xff]  }
  0xa4   :  { %v3065_v11 = vld [vmem:[#allocation4 + $0x30] ss:$24 sps:$4 sm:$0xff]   ;;  %v3073_v12 = vld [vmem:[#allocation4 + $0x4] ss:$24 sps:$4 sm:$0xff]   ;;  %v3071_v13 = vld [vmem:[#allocation4] ss:$24 sps:$4 sm:$0xff]  }
  0xa5   :  { %561 = vmatpush1.bf16.msra.mxu1 %v3013_v30  ;;  %v3044_v14 = vld [vmem:[#allocation4 + $0xf8] ss:$24 sps:$4 sm:$0xff]   ;;  %v3079_v15 = vld [vmem:[#allocation4 + $0x2d4] ss:$24 sps:$4 sm:$0xff]   ;;  %v3050_v18 = vld [vmem:[#allocation4 + $0xc8] ss:$24 sps:$4 sm:$0xff]  }
  0xa6   :  { %522 = vmatpush1.bf16.msra.mxu0 %v2977_v21  ;;  %562 = vmatprep.subr.bf16.mxu1 %v3016_v31  ;;  %v3052_v16 = vld [vmem:[#allocation4 + $0xcc] ss:$24 sps:$4 sm:$0xff]   ;;  %v3077_v17 = vld [vmem:[#allocation4 + $0x2d0] ss:$24 sps:$4 sm:$0xff]   ;;  %v3058_v20 = vld [vmem:[#allocation4 + $0x9c] ss:$24 sps:$4 sm:$0xff]  }
  0xa7   :  { %523 = vmatprep.subr.bf16.mxu0 %v2978_v24  ;;  %v3085_v19 = vld [vmem:[#allocation4 + $0x2a4] ss:$24 sps:$4 sm:$0xff]   ;;  %v3083_v21 = vld [vmem:[#allocation4 + $0x2a0] ss:$24 sps:$4 sm:$0xff]   ;;  %v3091_v23 = vld [vmem:[#allocation4 + $0x274] ss:$24 sps:$4 sm:$0xff]  }
  0xa8   :  { %v3056_v22 = vld [vmem:[#allocation4 + $0x98] ss:$24 sps:$4 sm:$0xff]   ;;  %v3064_v24 = vld [vmem:[#allocation4 + $0x6c] ss:$24 sps:$4 sm:$0xff]   ;;  %v3074_v34 = vld [vmem:[#allocation4 + $0x8] ss:$24 sps:$4 sm:$0xff]  }
  0xa9   :  { %563 = vmatpush1.bf16.msra.mxu1 %v3019_v36  ;;  %v3089_v25 = vld [vmem:[#allocation4 + $0x270] ss:$24 sps:$4 sm:$0xff]   ;;  %v3097_v27 = vld [vmem:[#allocation4 + $0x244] ss:$24 sps:$4 sm:$0xff]   ;;  %v3103_v31 = vld [vmem:[#allocation4 + $0x214] ss:$24 sps:$4 sm:$0xff]  }
  0xaa   :  { %524 = vmatpush1.bf16.msra.mxu0 %v2982_v26  ;;  %564 = vmatprep.subr.bf16.mxu1 %v3022_v37  ;;  %v3062_v26 = vld [vmem:[#allocation4 + $0x68] ss:$24 sps:$4 sm:$0xff]   ;;  %v3068_v30 = vld [vmem:[#allocation4 + $0x38] ss:$24 sps:$4 sm:$0xff]   ;;  %v3076_v32 = vld [vmem:[#allocation4 + $0xc] ss:$24 sps:$4 sm:$0xff]  }
  0xab   :  { %525 = vmatprep.subr.bf16.mxu0 %v2984_v28  ;;  %v3070_v28 = vld [vmem:[#allocation4 + $0x3c] ss:$24 sps:$4 sm:$0xff]   ;;  %v3080_v36 = vld [vmem:[#allocation4 + $0x2d8] ss:$24 sps:$4 sm:$0xff]   ;;  %v3088_v37 = vld [vmem:[#allocation4 + $0x2ac] ss:$24 sps:$4 sm:$0xff]  }
  0xac   :  { %v3094_v39 = vld [vmem:[#allocation4 + $0x27c] ss:$24 sps:$4 sm:$0xff]   ;;  %v3740_v63 = vshrl.u32 %v259_v61, 7  ;;  %vm2524_vm7 = vcmask 785408  }
  0xad   :  { %565 = vmatpush1.bf16.msra.mxu1 %v3025_v41  ;;  %v3100_v41 = vld [vmem:[#allocation4 + $0x24c] ss:$24 sps:$4 sm:$0xff]  }
  0xae   :  { %526 = vmatpush2.bf16.msra.mxu0 %v2988_v29  ;;  %1201 = vmatprep.subr.bf16.mxu1 %v3031_v42  ;;  %v3095_v29 = vld [vmem:[#allocation4 + $0x240] ss:$24 sps:$4 sm:$0xff]  }
  0xaf   :  { %527 = vmatprep.subr.bf16.mxu0 %v2990_v33  ;;  %v3101_v33 = vld [vmem:[#allocation4 + $0x210] ss:$24 sps:$4 sm:$0xff]  }
  0xb0   :  { %2646 = vmatmul.mubr.msk.bf16.vlgmr.msra.gmra.mxu1 %vm2644_vm1, %v2645_v44  ;;  %v3098_v42 = vld [vmem:[#allocation4 + $0x248] ss:$24 sps:$4 sm:$0xff]  }
  0xb1   :  { %1202 = vmatpush1.bf16.msra.mxu1 %v3029_v46  ;;  %v3107_v44 = vld [vmem:[#allocation4 + $0x1e0] ss:$24 sps:$4 sm:$0xff]  }
  0xb2   :  { %528 = vmatpush2.bf16.msra.mxu0 %v2994_v35  ;;  %1203 = vmatprep.subr.bf16.mxu1 %v3037_v47  ;;  %v3082_v35 = vld [vmem:[#allocation4 + $0x2dc] ss:$24 sps:$4 sm:$0xff]   ;;  %v3104_v46 = vld [vmem:[#allocation4 + $0x218] ss:$24 sps:$4 sm:$0xff]   ;;  %v3112_v47 = vld [vmem:[#allocation4 + $0x1ec] ss:$24 sps:$4 sm:$0xff]  }
  0xb3   :  { %529 = vmatprep.subr.bf16.mxu0 %v2996_v38  ;;  %v3086_v38 = vld [vmem:[#allocation4 + $0x2a8] ss:$24 sps:$4 sm:$0xff]  }
  0xb5   :  { %1204 = vmatpush1.bf16.msra.mxu1 %v3035_v50  ;;  %v3113_v50 = vld [vmem:[#allocation4 + $0x1b0] ss:$24 sps:$4 sm:$0xff]  }
  0xb6   :  { %530 = vmatpush2.bf16.msra.mxu0 %v3000_v40  ;;  %1205 = vmatprep.subr.bf16.mxu1 %v3043_v51  ;;  %v3092_v40 = vld [vmem:[#allocation4 + $0x278] ss:$24 sps:$4 sm:$0xff]   ;;  %v3118_v51 = vld [vmem:[#allocation4 + $0x1bc] ss:$24 sps:$4 sm:$0xff]  }
  0xb7   :  { %531 = vmatprep.subr.bf16.mxu0 %v3002_v43  ;;  %v3106_v43 = vld [vmem:[#allocation4 + $0x21c] ss:$24 sps:$4 sm:$0xff]  }
  0xb9   :  { %1206 = vmatpush1.bf16.msra.mxu1 %v3041_v54  ;;  %v3119_v54 = vld [vmem:[#allocation4 + $0x180] ss:$24 sps:$4 sm:$0xff]  }
  0xba   :  { %532 = vmatpush2.bf16.msra.mxu0 %v3006_v45  ;;  %1207 = vmatprep.subr.bf16.mxu1 %v3049_v55  ;;  %v3109_v45 = vld [vmem:[#allocation4 + $0x1e4] ss:$24 sps:$4 sm:$0xff]  }
  0xbb   :  { %533 = vmatprep.subr.bf16.mxu0 %v3008_v48  ;;  %v3110_v48 = vld [vmem:[#allocation4 + $0x1e8] ss:$24 sps:$4 sm:$0xff]   ;;  %v3124_v55 = vld [vmem:[#allocation4 + $0x18c] ss:$24 sps:$4 sm:$0xff]  }
  0xbd   :  { %1208 = vmatpush1.bf16.msra.mxu1 %v3047_v58 }
  0xbe   :  { %534 = vmatpush2.bf16.msra.mxu0 %v3012_v49  ;;  %1209 = vmatprep.subr.bf16.mxu1 %v3055_v59  ;;  %v3115_v49 = vld [vmem:[#allocation4 + $0x1b4] ss:$24 sps:$4 sm:$0xff]  }
  0xbf   :  { %535 = vmatprep.subr.bf16.mxu0 %v3014_v52  ;;  %v3116_v52 = vld [vmem:[#allocation4 + $0x1b8] ss:$24 sps:$4 sm:$0xff]  }
  0xc1   :  { %1210 = vmatpush1.bf16.msra.mxu1 %v3053_v1  ;;  %v3743_v1 = vsub.s32 0, %v3740_v63 }
  0xc2   :  { %536 = vmatpush2.bf16.msra.mxu0 %v3018_v53  ;;  %1211 = vmatprep.subr.bf16.mxu1 %v3061_v2  ;;  %v3121_v53 = vld [vmem:[#allocation4 + $0x184] ss:$24 sps:$4 sm:$0xff]   ;;  %v257_v2 = vld [vmem:[%s3970_s4] sm:$0x3] }
  0xc3   :  { %537 = vmatprep.subr.bf16.mxu0 %v3020_v56  ;;  %v3122_v56 = vld [vmem:[#allocation4 + $0x188] ss:$24 sps:$4 sm:$0xff]  }
  0xc5   :  { %1212 = vmatpush1.bf16.msra.mxu1 %v3059_v6 }
  0xc6   :  { %538 = vmatpush2.bf16.msra.mxu0 %v3024_v57  ;;  %1213 = vmatprep.subr.bf16.mxu1 %v3067_v7  ;;  %v3127_v57 = vld [vmem:[#allocation4 + $0x164] ss:$24 sps:$4 sm:$0xff]  }
  0xc7   :  { %539 = vmatprep.subr.bf16.mxu0 %v3026_v60 }
  0xc9   :  { %1214 = vmatpush1.bf16.msra.mxu1 %v3065_v11 }
  0xca   :  { %540 = vmatpush2.bf16.msra.mxu0 %v3028_v62  ;;  %1215 = vmatprep.subr.bf16.mxu1 %v3073_v12 }
  0xcb   :  { %1242 = vmatprep.subr.bf16.mxu0 %v3034_v3  ;;  %v3749_v3 = vsub.s32 1, %v3740_v63 }
  0xcd   :  { %2643 = vmatmul.mubr.msk.bf16.vlgmr.msra.gmra.mxu0 %vm2641_vm4, %v2642_v4  ;;  %1216 = vmatpush1.bf16.msra.mxu1 %v3071_v13  ;;  %v262_v4 = vrot.slane %v257_v2, %v3743_v1 }
  0xce   :  { %1243 = vmatpush1.bf16.msra.mxu0 %v3032_v5  ;;  %1217 = vmatprep.subr.bf16.mxu1 %v3079_v15  ;;  %v266_v5 = vrot.slane %v257_v2, %v3749_v3  ;;  %v3125_v15 = vld [vmem:[#allocation4 + $0x160] ss:$24 sps:$4 sm:$0xff]   ;;  %v3793_v2 = vld [vmem:[%s3968_s2 + $0x48] sm:$0xff] }
  0xcf   :  { %1244 = vmatprep.subr.bf16.mxu0 %v3040_v8 }
  0xd1   :  { %1218 = vmatpush2.bf16.msra.mxu1 %v3077_v17  ;;  %v3130_v17 = vld [vmem:[#allocation4 + $0x134] ss:$24 sps:$4 sm:$0xff]  }
  0xd2   :  { %1245 = vmatpush1.bf16.msra.mxu0 %v3038_v9  ;;  %1219 = vmatprep.subr.bf16.mxu1 %v3085_v19  ;;  %v3133_v19 = vld [vmem:[#allocation4 + $0x104] ss:$24 sps:$4 sm:$0xff]  }
  0xd3   :  { %1246 = vmatprep.subr.bf16.mxu0 %v3046_v10 }
  0xd5   :  { %1220 = vmatpush2.bf16.msra.mxu1 %v3083_v21  ;;  %v3136_v21 = vld [vmem:[#allocation4 + $0xd4] ss:$24 sps:$4 sm:$0xff]  }
  0xd6   :  { %1247 = vmatpush1.bf16.msra.mxu0 %v3044_v14  ;;  %1221 = vmatprep.subr.bf16.mxu1 %v3091_v23  ;;  %v3139_v23 = vld [vmem:[#allocation4 + $0xa4] ss:$24 sps:$4 sm:$0xff]  }
  0xd7   :  { %1248 = vmatprep.subr.bf16.mxu0 %v3052_v16 }
  0xd9   :  { %1222 = vmatpush2.bf16.msra.mxu1 %v3089_v25  ;;  %v3142_v25 = vld [vmem:[#allocation4 + $0x74] ss:$24 sps:$4 sm:$0xff]  }
  0xda   :  { %1249 = vmatpush1.bf16.msra.mxu0 %v3050_v18  ;;  %1223 = vmatprep.subr.bf16.mxu1 %v3097_v27  ;;  %v3128_v18 = vld [vmem:[#allocation4 + $0x130] ss:$24 sps:$4 sm:$0xff]   ;;  %v3145_v27 = vld [vmem:[#allocation4 + $0x44] ss:$24 sps:$4 sm:$0xff]  }
  0xdb   :  { %1250 = vmatprep.subr.bf16.mxu0 %v3058_v20  ;;  %v3131_v20 = vld [vmem:[#allocation4 + $0x100] ss:$24 sps:$4 sm:$0xff]  }
  0xdd   :  { %1224 = vmatpush2.bf16.msra.mxu1 %v3095_v29  ;;  %v3148_v29 = vld [vmem:[#allocation4 + $0x14] ss:$24 sps:$4 sm:$0xff]  }
  0xde   :  { %1251 = vmatpush1.bf16.msra.mxu0 %v3056_v22  ;;  %1225 = vmatprep.subr.bf16.mxu1 %v3103_v31  ;;  %v3134_v22 = vld [vmem:[#allocation4 + $0xd0] ss:$24 sps:$4 sm:$0xff]   ;;  %v3151_v31 = vld [vmem:[#allocation4 + $0x2e4] ss:$24 sps:$4 sm:$0xff]  }
  0xdf   :  { %1252 = vmatprep.subr.bf16.mxu0 %v3064_v24  ;;  %v3137_v24 = vld [vmem:[#allocation4 + $0xa0] ss:$24 sps:$4 sm:$0xff]  }
  0xe1   :  { %1226 = vmatpush2.bf16.msra.mxu1 %v3101_v33  ;;  %v3154_v33 = vld [vmem:[#allocation4 + $0x2b4] ss:$24 sps:$4 sm:$0xff]  }
  0xe2   :  { %1253 = vmatpush1.bf16.msra.mxu0 %v3062_v26  ;;  %1227 = vmatprep.subr.bf16.mxu1 %v3109_v45  ;;  %v3140_v26 = vld [vmem:[#allocation4 + $0x70] ss:$24 sps:$4 sm:$0xff]   ;;  %v3172_v45 = vld [vmem:[#allocation4 + $0x194] ss:$24 sps:$4 sm:$0xff]  }
  0xe3   :  { %1254 = vmatprep.subr.bf16.mxu0 %v3070_v28  ;;  %v3143_v28 = vld [vmem:[#allocation4 + $0x40] ss:$24 sps:$4 sm:$0xff]  }
  0xe5   :  { %1228 = vmatpush2.bf16.msra.mxu1 %v3107_v44  ;;  %v3167_v44 = vld [vmem:[#allocation4 + $0x1c0] ss:$24 sps:$4 sm:$0xff]  }
  0xe6   :  { %1255 = vmatpush1.bf16.msra.mxu0 %v3068_v30  ;;  %1229 = vmatprep.subr.bf16.mxu1 %v3115_v49  ;;  %v3146_v30 = vld [vmem:[#allocation4 + $0x10] ss:$24 sps:$4 sm:$0xff]   ;;  %v705_v49 = vsub.s32 3, %v3740_v63 }
  0xe7   :  { %1256 = vmatprep.subr.bf16.mxu0 %v3076_v32  ;;  %v3149_v32 = vld [vmem:[#allocation4 + $0x2e0] ss:$24 sps:$4 sm:$0xff]  }
  0xe9   :  { %1230 = vmatpush2.bf16.msra.mxu1 %v3113_v50 }
  0xea   :  { %1257 = vmatpush1.bf16.msra.mxu0 %v3074_v34  ;;  %1231 = vmatprep.subr.bf16.mxu1 %v3121_v53  ;;  %v3152_v34 = vld [vmem:[#allocation4 + $0x2b0] ss:$24 sps:$4 sm:$0xff]  }
  0xeb   :  { %1258 = vmatprep.subr.bf16.mxu0 %v3082_v35  ;;  %v3157_v35 = vld [vmem:[#allocation4 + $0x284] ss:$24 sps:$4 sm:$0xff]  }
  0xed   :  { %1232 = vmatpush2.bf16.msra.mxu1 %v3119_v54 }
  0xee   :  { %1259 = vmatpush2.bf16.msra.mxu0 %v3080_v36  ;;  %1283 = vmatprep.subr.bf16.mxu1 %v3127_v57  ;;  %v3155_v36 = vld [vmem:[#allocation4 + $0x280] ss:$24 sps:$4 sm:$0xff]   ;;  %v3778_v57 = vld [vmem:[%s3968_s2 + $0x70] sm:$0xff] }
  0xef   :  { %1260 = vmatprep.subr.bf16.mxu0 %v3088_v37  ;;  %v3160_v37 = vld [vmem:[#allocation4 + $0x254] ss:$24 sps:$4 sm:$0xff]  }
  0xf2   :  { %1261 = vmatpush2.bf16.msra.mxu0 %v3086_v38  ;;  %v3158_v38 = vld [vmem:[#allocation4 + $0x250] ss:$24 sps:$4 sm:$0xff]  }
  0xf3   :  { %1262 = vmatprep.subr.bf16.mxu0 %v3094_v39  ;;  %v3163_v39 = vld [vmem:[#allocation4 + $0x224] ss:$24 sps:$4 sm:$0xff]  }
  0xf6   :  { %1263 = vmatpush2.bf16.msra.mxu0 %v3092_v40  ;;  %v3161_v40 = vld [vmem:[#allocation4 + $0x220] ss:$24 sps:$4 sm:$0xff]  }
  0xf7   :  { %1264 = vmatprep.subr.bf16.mxu0 %v3100_v41  ;;  %v3166_v41 = vld [vmem:[#allocation4 + $0x1f4] ss:$24 sps:$4 sm:$0xff]  }
  0xfa   :  { %1265 = vmatpush2.bf16.msra.mxu0 %v3098_v42  ;;  %v3164_v42 = vld [vmem:[#allocation4 + $0x1f0] ss:$24 sps:$4 sm:$0xff]  }
  0xfb   :  { %1266 = vmatprep.subr.bf16.mxu0 %v3106_v43  ;;  %v3169_v43 = vld [vmem:[#allocation4 + $0x1c4] ss:$24 sps:$4 sm:$0xff]  }
  0xfe   :  { %1267 = vmatpush2.bf16.msra.mxu0 %v3104_v46  ;;  %v3170_v46 = vld [vmem:[#allocation4 + $0x190] ss:$24 sps:$4 sm:$0xff]  }
  0xff   :  { %1268 = vmatprep.subr.bf16.mxu0 %v3112_v47  ;;  %v701_v47 = vsub.s32 2, %v3740_v63 }
 0x102   :  { %1269 = vmatpush2.bf16.msra.mxu0 %v3110_v48  ;;  %v3763_v48 = vld [vmem:[%s3972_s6] sm:$0x3f] }
 0x103   :  { %1270 = vmatprep.subr.bf16.mxu0 %v3118_v51  ;;  %v702_v50 = vrot.slane %v3763_v48, %v701_v47  ;;  %v698_v51 = vrot.slane %v3763_v48, %v3749_v3 }
 0x106   :  { %1271 = vmatpush2.bf16.msra.mxu0 %v3116_v52  ;;  %v706_v52 = vrot.slane %v3763_v48, %v705_v49 }
 0x107   :  { %1272 = vmatprep.subr.bf16.mxu0 %v3124_v55 }
 0x10a   :  { %1273 = vmatpush2.bf16.msra.mxu0 %v3122_v56  ;;  %v3773_v56 = vld [vmem:[%s3968_s2 + $0x60] sm:$0xff] }
 0x170   :  { %v584_v58 = vpop.f32.mrf.mxu1 }
 0x172   :  { %v586_v59 = vpop.f32.mrf.mxu1 }
 0x174   :  { %v588_v60 = vpop.f32.mrf.mxu1 }
 0x175   :  { %v3783_v60 = vld [vmem:[%s3968_s2 + $0x68] sm:$0xff] }
 0x176   :  { %v589_v62 = vpop.f32.mrf.mxu1 }
 0x177   :  { %v3788_v62 = vld [vmem:[%s3968_s2 + $0x78] sm:$0xff] }
 0x18d   :  { %v543_v6 = vpop.f32.mrf.mxu0 }
 0x18e   :  { %v544_v7 = vadd.f32 %v543_v6, %v262_v4  ;;  %v3798_v6 = vld [vmem:[%s3968_s2 + $0x58] sm:$0xff] }
 0x18f   :  { %v545_v8 = vpop.f32.mrf.mxu0 }
 0x190   :  { %v546_v9 = vadd.f32 %v545_v8, %v266_v5  ;;  %v585_v10 = vadd.f32 %v584_v58, %v544_v7 }
 0x191   :  { %v547_v11 = vpop.f32.mrf.mxu0 }
 0x192   :  { %v587_v12 = vadd.f32 %v586_v59, %v546_v9  ;;  %v3753_v16 = vpack.c.bf16 %v585_v10, %v585_v10 }
 0x193   :  { %v548_v13 = vpop.f32.mrf.mxu0 }
 0x194   :  { %v592_v14 = vpack.c.bf16 %v587_v12, %v587_v12 }
 0x196   :  { %1233 = vmatprep.mubr.bf16.mxu1 %v592_v14  ;;  %1274 = vmatprep.mubr.bf16.mxu0 %v592_v14 }
 0x197   :  { %1234 = vmatmul.mubr.bf16.vlgmr.msra.gmra.mxu1 %v3753_v16  ;;  %1275 = vmatmul.mubr.bf16.vlgmr.msra.gmra.mxu0 %v3753_v16 }
 0x198   :  { %1284 = vmatpush1.bf16.msra.mxu1 %v3125_v15  ;;  %1315 = vmatprep.mubr.bf16.mxu1 %v592_v14 }
 0x199   :  { %1285 = vmatprep.subr.bf16.mxu1 %v3130_v17 }
 0x19c   :  { %1286 = vmatpush1.bf16.msra.mxu1 %v3128_v18 }
 0x19d   :  { %1287 = vmatprep.subr.bf16.mxu1 %v3133_v19 }
 0x1a0   :  { %1288 = vmatpush1.bf16.msra.mxu1 %v3131_v20 }
 0x1a1   :  { %1289 = vmatprep.subr.bf16.mxu1 %v3136_v21  ;;  %v3809_v21 = vld [vmem:[%s3968_s2 + $0x40] sm:$0xff] }
 0x1a4   :  { %1290 = vmatpush1.bf16.msra.mxu1 %v3134_v22  ;;  %v3814_v22 = vld [vmem:[%s3968_s2 + $0x50] sm:$0xff] }
 0x1a5   :  { %1291 = vmatprep.subr.bf16.mxu1 %v3139_v23  ;;  %v3819_v23 = vld [vmem:[%s3968_s2 + $0x28] sm:$0xff] }
 0x1a8   :  { %1292 = vmatpush1.bf16.msra.mxu1 %v3137_v24  ;;  %v3824_v24 = vld [vmem:[%s3968_s2 + $0x38] sm:$0xff] }
 0x1a9   :  { %1293 = vmatprep.subr.bf16.mxu1 %v3142_v25 }
 0x1ac   :  { %1294 = vmatpush1.bf16.msra.mxu1 %v3140_v26 }
 0x1ad   :  { %1295 = vmatprep.subr.bf16.mxu1 %v3145_v27 }
 0x1b0   :  { %1296 = vmatpush1.bf16.msra.mxu1 %v3143_v28 }
 0x1b1   :  { %1297 = vmatprep.subr.bf16.mxu1 %v3148_v29 }
 0x1b4   :  { %1298 = vmatpush1.bf16.msra.mxu1 %v3146_v30 }
 0x1b5   :  { %1299 = vmatprep.subr.bf16.mxu1 %v3151_v31  ;;  %v3833_v31 = vld [vmem:[%s3968_s2 + $0x20] sm:$0xff] }
 0x1b8   :  { %1300 = vmatpush2.bf16.msra.mxu1 %v3149_v32  ;;  %v3838_v32 = vld [vmem:[%s3968_s2 + $0x30] sm:$0xff] }
 0x1b9   :  { %1301 = vmatprep.subr.bf16.mxu1 %v3154_v33  ;;  %v3843_v33 = vld [vmem:[%s3968_s2 + $0x8] sm:$0xff] }
 0x1bc   :  { %1302 = vmatpush2.bf16.msra.mxu1 %v3152_v34  ;;  %v3848_v34 = vld [vmem:[%s3968_s2 + $0x18] sm:$0xff] }
 0x1bd   :  { %1303 = vmatprep.subr.bf16.mxu1 %v3157_v35 }
 0x1c0   :  { %1304 = vmatpush2.bf16.msra.mxu1 %v3155_v36 }
 0x1c1   :  { %1305 = vmatprep.subr.bf16.mxu1 %v3160_v37 }
 0x1c4   :  { %1306 = vmatpush2.bf16.msra.mxu1 %v3158_v38 }
 0x1c5   :  { %1307 = vmatprep.subr.bf16.mxu1 %v3163_v39 }
 0x1c8   :  { %1308 = vmatpush2.bf16.msra.mxu1 %v3161_v40 }
 0x1c9   :  { %1309 = vmatprep.subr.bf16.mxu1 %v3166_v41  ;;  %v3857_v41 = vld [vmem:[%s3968_s2] sm:$0xff] }
 0x1cc   :  { %1310 = vmatpush2.bf16.msra.mxu1 %v3164_v42  ;;  %v3862_v42 = vld [vmem:[%s3968_s2 + $0x10] sm:$0xff] }
 0x1cd   :  { %1311 = vmatprep.subr.bf16.mxu1 %v3169_v43 }
 0x1d0   :  { %1312 = vmatpush2.bf16.msra.mxu1 %v3167_v44 }
 0x1d1   :  { %1313 = vmatprep.subr.bf16.mxu1 %v3172_v45  ;;  %v694_v45 = vrot.slane %v3763_v48, %v3743_v1 }
 0x1d4   :  { %1314 = vmatpush2.bf16.msra.mxu1 %v3170_v46 }
 0x1d7   :  { %1316 = vmatmul.mubr.bf16.vlgmr.msra.gmra.mxu1 %v3753_v16 }
 0x1d8   :  { %1523 = vmatprep.mubr.bf16.mxu1 %v3596_v0 }
 0x257   :  { %v1235_v53 = vpop.f32.mrf.mxu1  ;;  %v1276_v54 = vpop.f32.mrf.mxu0 }
 0x258   :  { %v1277_v55 = vadd.f32 %v1276_v54, %v702_v50  ;;  %v1236_v47 = vadd.f32 %v1235_v53, %v694_v45  ;;  %v709_v50 = vsub.s32 4, %v3740_v63  ;;  %v1490_v45 = vpack.c.bf16 %v3788_v62, %v3783_v60 }
 0x259   :  { %v1237_v58 = vpop.f32.mrf.mxu1  ;;  %v1278_v59 = vpop.f32.mrf.mxu0 }
 0x25a   :  { %v1238_v4 = vadd.f32 %v1237_v58, %v698_v51  ;;  %v1279_v5 = vadd.f32 %v1278_v59, %v706_v52  ;;  %v1352_v9 = vmul.f32 %v3773_v56, %v1277_v55  ;;  %v1354_v10 = vmul.f32 %v3778_v57, %v1277_v55  ;;  %1499 = vmatprep.subr.bf16.mxu1 %v1490_v45  ;;  %v3263_v45 = vld [vmem:[#allocation9] ss:$16 sps:$4 sm:$0xff]  }
 0x25b   :  { %v1239_v7 = vpop.f32.mrf.mxu1  ;;  %v1280_v8 = vpop.f32.mrf.mxu0  ;;  %v1348_v25 = vmul.f32 %v3809_v21, %v1277_v55  ;;  %v1350_v26 = vmul.f32 %v3814_v22, %v1277_v55  ;;  %v1344_v35 = vmul.f32 %v3833_v31, %v1277_v55  ;;  %v1346_v36 = vmul.f32 %v3838_v32, %v1277_v55 }
 0x25c   :  { %v1389_v11 = vpack.c.bf16 %v1238_v4, %v1238_v4  ;;  %v1353_v12 = vmul.f32 %v3783_v60, %v1279_v5  ;;  %v1355_v13 = vmul.f32 %v3788_v62, %v1279_v5  ;;  %v1349_v14 = vmul.f32 %v3793_v2, %v1279_v5 }
 0x25d   :  { %v1240_v15 = vpop.f32.mrf.mxu1  ;;  %v1281_v16 = vpop.f32.mrf.mxu0  ;;  %v1351_v17 = vmul.f32 %v3798_v6, %v1279_v5  ;;  %v1362_v19 = vpack.c.bf16 %v1354_v10, %v1352_v9  ;;  %v1345_v27 = vmul.f32 %v3819_v23, %v1279_v5  ;;  %v1347_v28 = vmul.f32 %v3824_v24, %v1279_v5 }
 0x25e   :  { %1423 = vmatprep.mubr.bf16.mxu0 %v1389_v11  ;;  %v1363_v18 = vpack.c.bf16 %v1355_v13, %v1353_v12  ;;  %v1360_v29 = vpack.c.bf16 %v1350_v26, %v1348_v25  ;;  %v1341_v37 = vmul.f32 %v3843_v33, %v1279_v5  ;;  %v1343_v38 = vmul.f32 %v3848_v34, %v1279_v5 }
 0x25f   :  { %v1361_v20 = vpack.c.bf16 %v1351_v17, %v1349_v14  ;;  %v1359_v30 = vpack.c.bf16 %v1347_v28, %v1345_v27  ;;  %v1358_v39 = vpack.c.bf16 %v1346_v36, %v1344_v35  ;;  %v1340_v43 = vmul.f32 %v3857_v41, %v1277_v55  ;;  %v1390_v36 = vld [vmem:[%s3989_s21] sm:$0xff] }
 0x260   :  { %1399 = vmatprep.subr.bf16.mxu0 %v1363_v18  ;;  %v1357_v40 = vpack.c.bf16 %v1343_v38, %v1341_v37  ;;  %v1342_v44 = vmul.f32 %v3862_v42, %v1277_v55  ;;  %v1388_v49 = vpack.c.bf16 %v1236_v47, %v1236_v47  ;;  %v713_v51 = vsub.s32 5, %v3740_v63 }
 0x261   :  { %1400 = vmatpush1.bf16.xpose.msra.mxu0 %v1362_v19  ;;  %v710_v52 = vrot.slane %v3763_v48, %v709_v50  ;;  %v1488_v47 = vpack.c.bf16 %v3798_v6, %v3793_v2  ;;  %v1486_v50 = vpack.c.bf16 %v3824_v24, %v3819_v23 }
 0x262   :  { %1401 = vmatprep.subr.bf16.mxu0 %v1361_v20  ;;  %v1356_v46 = vpack.c.bf16 %v1342_v44, %v1340_v43  ;;  %v714_v54 = vrot.slane %v3763_v48, %v713_v51  ;;  %v1485_v51 = vpack.c.bf16 %v3838_v32, %v3833_v31 }
 0x269   :  { %1402 = vmatpush1.bf16.xpose.msra.mxu0 %v1360_v29 }
 0x26a   :  { %1403 = vmatprep.subr.bf16.mxu0 %v1359_v30 }
 0x271   :  { %1404 = vmatpush1.bf16.xpose.msra.mxu0 %v1358_v39 }
 0x272   :  { %1405 = vmatprep.subr.bf16.mxu0 %v1357_v40 }
 0x279   :  { %1406 = vmatpush1.bf16.xpose.msra.mxu0 %v1356_v46  ;;  %v1489_v46 = vpack.c.bf16 %v3778_v57, %v3773_v56 }
 0x27b   :  { %1500 = vmatpush1.bf16.msra.mxu1 %v1489_v46  ;;  %v3271_v46 = vld [vmem:[#allocation9 + $0x1e4] ss:$16 sps:$4 sm:$0xff]  }
 0x27c   :  { %1501 = vmatprep.subr.bf16.mxu1 %v1488_v47  ;;  %v3269_v47 = vld [vmem:[#allocation9 + $0x1e0] ss:$16 sps:$4 sm:$0xff]  }
 0x280   :  { %1424 = vmatmul.mubr.bf16.vlgmr.msra.gmra.mxu0 %v1388_v49  ;;  %v1487_v49 = vpack.c.bf16 %v3814_v22, %v3809_v21 }
 0x281   :  { %1474 = vmatprep.mubr.bf16.mxu0 %v3596_v0 }
 0x282   :  { %1502 = vmatpush1.bf16.msra.mxu1 %v1487_v49  ;;  %v3277_v49 = vld [vmem:[#allocation9 + $0x1c4] ss:$16 sps:$4 sm:$0xff]  }
 0x283   :  { %1503 = vmatprep.subr.bf16.mxu1 %v1486_v50  ;;  %v3275_v50 = vld [vmem:[#allocation9 + $0x1c0] ss:$16 sps:$4 sm:$0xff]  }
 0x286   :  { %1504 = vmatpush1.bf16.msra.mxu1 %v1485_v51  ;;  %v3283_v51 = vld [vmem:[#allocation9 + $0x1a4] ss:$16 sps:$4 sm:$0xff]  }
 0x297   :  { %v1317_v58 = vpop.f32.mrf.mxu1 }
 0x298   :  { %v1318_v55 = vadd.f32 %v1317_v58, %v710_v52  ;;  %v3185_v52 = vld [vmem:[#allocation6 + $0x30] ss:$8 sps:$4 sm:$0xff]   ;;  %v3188_v58 = vld [vmem:[#allocation6 + $0x20] ss:$8 sps:$4 sm:$0xff]  }
 0x299   :  { %v1319_v59 = vpop.f32.mrf.mxu1 }
 0x29a   :  { %v1320_v4 = vadd.f32 %v1319_v59, %v714_v54  ;;  %v1376_v7 = vmul.f32 %v3773_v56, %v1318_v55  ;;  %v1378_v53 = vmul.f32 %v3778_v57, %v1318_v55  ;;  %v1372_v12 = vmul.f32 %v3809_v21, %v1318_v55  ;;  %v3190_v54 = vld [vmem:[#allocation6 + $0x24] ss:$8 sps:$4 sm:$0xff]   ;;  %v3191_v59 = vld [vmem:[#allocation6 + $0x10] ss:$8 sps:$4 sm:$0xff]  }
 0x29b   :  { %v1321_v5 = vpop.f32.mrf.mxu1  ;;  %v1374_v13 = vmul.f32 %v3814_v22, %v1318_v55  ;;  %v1368_v18 = vmul.f32 %v3833_v31, %v1318_v55  ;;  %v1370_v19 = vmul.f32 %v3838_v32, %v1318_v55  ;;  %v1364_v28 = vmul.f32 %v3857_v41, %v1318_v55  ;;  %v3173_v22 = vld [vmem:[#allocation6 + $0x70] ss:$8 sps:$4 sm:$0xff]   ;;  %v3176_v31 = vld [vmem:[#allocation6 + $0x60] ss:$8 sps:$4 sm:$0xff]   ;;  %v3181_v32 = vld [vmem:[#allocation6 + $0x54] ss:$8 sps:$4 sm:$0xff]  }
 0x29c   :  { %v1377_v8 = vmul.f32 %v3783_v60, %v1320_v4  ;;  %v1379_v0 = vmul.f32 %v3788_v62, %v1320_v4  ;;  %v1373_v9 = vmul.f32 %v3793_v2, %v1320_v4  ;;  %v1375_v10 = vmul.f32 %v3798_v6, %v1320_v4  ;;  %v3175_v60 = vld [vmem:[#allocation6 + $0x74] ss:$8 sps:$4 sm:$0xff]   ;;  %v3194_v5 = vld [vmem:[#allocation6] ss:$8 sps:$4 sm:$0xff]  }
 0x29d   :  { %v1322_v63 = vpop.f32.mrf.mxu1  ;;  %v1386_v48 = vpack.c.bf16 %v1378_v53, %v1376_v7  ;;  %v1369_v15 = vmul.f32 %v3819_v23, %v1320_v4  ;;  %v1371_v16 = vmul.f32 %v3824_v24, %v1320_v4  ;;  %v1384_v17 = vpack.c.bf16 %v1374_v13, %v1372_v12  ;;  %v3178_v24 = vld [vmem:[#allocation6 + $0x64] ss:$8 sps:$4 sm:$0xff]   ;;  %v3199_v7 = vld [vmem:[#allocation6 + $0xf4] ss:$8 sps:$4 sm:$0xff]   ;;  %v3197_v53 = vld [vmem:[#allocation6 + $0xf0] ss:$8 sps:$4 sm:$0xff]  }
 0x29e   :  { %v1387_v11 = vpack.c.bf16 %v1379_v0, %v1377_v8  ;;  %v1385_v14 = vpack.c.bf16 %v1375_v10, %v1373_v9  ;;  %v1365_v25 = vmul.f32 %v3843_v33, %v1320_v4  ;;  %v1367_v26 = vmul.f32 %v3848_v34, %v1320_v4  ;;  %v3196_v4 = vld [vmem:[#allocation6 + $0x4] ss:$8 sps:$4 sm:$0xff]   ;;  %v3200_v0 = vld [vmem:[#allocation6 + $0xe0] ss:$8 sps:$4 sm:$0xff]   ;;  %v3205_v9 = vld [vmem:[#allocation6 + $0xd4] ss:$8 sps:$4 sm:$0xff]  }
 0x29f   :  { %v1383_v20 = vpack.c.bf16 %v1371_v16, %v1369_v15  ;;  %v1382_v27 = vpack.c.bf16 %v1370_v19, %v1368_v18  ;;  %v1366_v29 = vmul.f32 %v3862_v42, %v1318_v55  ;;  %v1484_v56 = vpack.c.bf16 %v3848_v34, %v3843_v33  ;;  %v3179_v33 = vld [vmem:[#allocation6 + $0x50] ss:$8 sps:$4 sm:$0xff]   ;;  %v3184_v34 = vld [vmem:[#allocation6 + $0x44] ss:$8 sps:$4 sm:$0xff]   ;;  %v3193_v55 = vld [vmem:[#allocation6 + $0x14] ss:$8 sps:$4 sm:$0xff]  }
 0x2a0   :  { %1450 = vmatprep.subr.bf16.mxu0 %v1387_v11  ;;  %v1381_v30 = vpack.c.bf16 %v1367_v26, %v1365_v25  ;;  %v1483_v57 = vpack.c.bf16 %v3862_v42, %v3857_v41  ;;  %v3182_v41 = vld [vmem:[#allocation6 + $0x40] ss:$8 sps:$4 sm:$0xff]   ;;  %v3187_v42 = vld [vmem:[#allocation6 + $0x34] ss:$8 sps:$4 sm:$0xff]   ;;  %v3202_v8 = vld [vmem:[#allocation6 + $0xe4] ss:$8 sps:$4 sm:$0xff]  }
 0x2a1   :  { %1451 = vmatpush1.bf16.msra.mxu0 %v1386_v48  ;;  %v1380_v35 = vpack.c.bf16 %v1366_v29, %v1364_v28  ;;  %1505 = vmatprep.subr.bf16.mxu1 %v1484_v56  ;;  %v3203_v63 = vld [vmem:[#allocation6 + $0xd0] ss:$8 sps:$4 sm:$0xff]   ;;  %v3206_v10 = vld [vmem:[#allocation6 + $0xc0] ss:$8 sps:$4 sm:$0xff]   ;;  %v3208_v11 = vld [vmem:[#allocation6 + $0xc4] ss:$8 sps:$4 sm:$0xff]  }
 0x2a2   :  { %1452 = vmatprep.subr.bf16.mxu0 %v1385_v14  ;;  %1506 = vmatpush1.bf16.msra.mxu1 %v1483_v57  ;;  %v3209_v48 = vld [vmem:[#allocation6 + $0xb0] ss:$8 sps:$4 sm:$0xff]   ;;  %v3211_v12 = vld [vmem:[#allocation6 + $0xb4] ss:$8 sps:$4 sm:$0xff]   ;;  %v3214_v13 = vld [vmem:[#allocation6 + $0xa4] ss:$8 sps:$4 sm:$0xff]  }
 0x2a3   :  { %v3212_v14 = vld [vmem:[#allocation6 + $0xa0] ss:$8 sps:$4 sm:$0xff]   ;;  %v3217_v15 = vld [vmem:[#allocation6 + $0x94] ss:$8 sps:$4 sm:$0xff]   ;;  %v3215_v16 = vld [vmem:[#allocation6 + $0x90] ss:$8 sps:$4 sm:$0xff]  }
 0x2a4   :  { %v3218_v18 = vld [vmem:[#allocation6 + $0x80] ss:$8 sps:$4 sm:$0xff]  }
 0x2a5   :  { %1453 = vmatpush1.bf16.msra.mxu0 %v1384_v17  ;;  %v3220_v17 = vld [vmem:[#allocation6 + $0x84] ss:$8 sps:$4 sm:$0xff]  }
 0x2a6   :  { %1454 = vmatprep.subr.bf16.mxu0 %v1383_v20  ;;  %v3221_v19 = vld [vmem:[#allocation9 + $0xe0] ss:$16 sps:$4 sm:$0xff]   ;;  %v3223_v20 = vld [vmem:[#allocation9 + $0xe4] ss:$16 sps:$4 sm:$0xff]   ;;  %v3226_v25 = vld [vmem:[#allocation9 + $0xec] ss:$16 sps:$4 sm:$0xff]  }
 0x2a7   :  { %v3229_v26 = vld [vmem:[#allocation9 + $0xc4] ss:$16 sps:$4 sm:$0xff]   ;;  %2169 = vmatprep.subr.bf16.mxu1 %v3223_v20  ;;  %v3233_v29 = vld [vmem:[#allocation9 + $0xa0] ss:$16 sps:$4 sm:$0xff]   ;;  %v3286_v20 = vld [vmem:[#allocation9 + $0x1ac] ss:$16 sps:$4 sm:$0xff]  }
 0x2a8   :  { %v3235_v28 = vld [vmem:[#allocation9 + $0xa4] ss:$16 sps:$4 sm:$0xff]   ;;  %v3281_v56 = vld [vmem:[#allocation9 + $0x1a0] ss:$16 sps:$4 sm:$0xff]  }
 0x2a9   :  { %1455 = vmatpush1.bf16.msra.mxu0 %v1382_v27  ;;  %v3227_v27 = vld [vmem:[#allocation9 + $0xc0] ss:$16 sps:$4 sm:$0xff]   ;;  %v3289_v57 = vld [vmem:[#allocation9 + $0x184] ss:$16 sps:$4 sm:$0xff]  }
 0x2aa   :  { %1456 = vmatprep.subr.bf16.mxu0 %v1381_v30  ;;  %v3241_v30 = vld [vmem:[#allocation9 + $0x84] ss:$16 sps:$4 sm:$0xff]  }
 0x2ad   :  { %1457 = vmatpush1.bf16.msra.mxu0 %v1380_v35  ;;  %v3239_v35 = vld [vmem:[#allocation9 + $0x80] ss:$16 sps:$4 sm:$0xff]  }
 0x2ae   :  { %1742 = vmatprep.subr.bf16.mxu0 %v3175_v60  ;;  %v3287_v60 = vld [vmem:[#allocation9 + $0x180] ss:$16 sps:$4 sm:$0xff]  }
 0x340   :  { %v1425_v37 = vpop.f32.mrf.mxu0 }
 0x341   :  { %v1426_v38 = vadd.f32 %v1425_v37, %v1390_v36  ;;  %v3247_v36 = vld [vmem:[#allocation9 + $0x64] ss:$16 sps:$4 sm:$0xff]   ;;  %v3245_v37 = vld [vmem:[#allocation9 + $0x60] ss:$16 sps:$4 sm:$0xff]  }
 0x342   :  { %v1427_v39 = vpop.f32.mrf.mxu0 }
 0x343   :  { %v1432_v40 = vsel %vm1431_vm5, %v1426_v38, -inf  ;;  %v3251_v39 = vld [vmem:[#allocation9 + $0x40] ss:$16 sps:$4 sm:$0xff]  }
 0x344   :  { %v1428_v43 = vpop.f32.mrf.mxu0  ;;  %1433 = vmax.xlane.f32.xlu0 %v1432_v40  ;;  %v3259_v40 = vld [vmem:[#allocation9 + $0x24] ss:$16 sps:$4 sm:$0xff]  }
 0x345   :  { %v3257_v43 = vld [vmem:[#allocation9 + $0x20] ss:$16 sps:$4 sm:$0xff]  }
 0x346   :  { %v1429_v44 = vpop.f32.mrf.mxu0 }
 0x347   :  { %v3265_v44 = vld [vmem:[#allocation9 + $0x4] ss:$16 sps:$4 sm:$0xff]  }
 0x3cd   :  { %v1434_v62 = vpop.xlane.xlu0 %1433 }
 0x3ce   :  { %v1435_v2 = vsub.f32 %v1426_v38, %v1434_v62  ;;  %v3253_v38 = vld [vmem:[#allocation9 + $0x44] ss:$16 sps:$4 sm:$0xff]  }
 0x3cf   :  { %v3295_v62 = vld [vmem:[#allocation9 + $0x164] ss:$16 sps:$4 sm:$0xff]  }
 0x3d0   :  { %v1436_v6 = vmul.f32 1.442695, %v1435_v2  ;;  %v3293_v2 = vld [vmem:[#allocation9 + $0x160] ss:$16 sps:$4 sm:$0xff]  }
 0x3d2   :  { %3335 = vpow2.f32 %v1436_v6  ;;  %v3301_v6 = vld [vmem:[#allocation9 + $0x144] ss:$16 sps:$4 sm:$0xff]  }
 0x3df   :  { %v3336_v21 = vpop.eup %3335 }
 0x3e0   :  { %v1438_v23 = vpack.c.bf16 %v3336_v21, %v3336_v21  ;;  %v3299_v21 = vld [vmem:[#allocation9 + $0x140] ss:$16 sps:$4 sm:$0xff]  }
 0x3e2   :  { %2743 = vmatmul.mubr.msk.bf16.vlgmr.msra.gmra.mxu0 %vm1431_vm5, %v1438_v23  ;;  %2744 = vmatmul.mubr.msk.bf16.vlgmr.msra.gmra.mxu1 %vm1431_vm5, %v1438_v23 }
 0x3e3   :  { %1743 = vmatpush1.bf16.msra.mxu0 %v3173_v22  ;;  %2170 = vmatpush1.bf16.msra.mxu1 %v3221_v19  ;;  %v3278_v19 = vld [vmem:[#allocation9 + $0x1c8] ss:$16 sps:$4 sm:$0xff]  }
 0x3e4   :  { %1744 = vmatprep.subr.bf16.mxu0 %v3178_v24  ;;  %2171 = vmatprep.subr.bf16.mxu1 %v3229_v26  ;;  %v3292_v26 = vld [vmem:[#allocation9 + $0x18c] ss:$16 sps:$4 sm:$0xff]  }
 0x3e7   :  { %1745 = vmatpush1.bf16.msra.mxu0 %v3176_v31  ;;  %2172 = vmatpush1.bf16.msra.mxu1 %v3227_v27  ;;  %v3290_v27 = vld [vmem:[#allocation9 + $0x188] ss:$16 sps:$4 sm:$0xff]  }
 0x3e8   :  { %1746 = vmatprep.subr.bf16.mxu0 %v3181_v32  ;;  %2173 = vmatprep.subr.bf16.mxu1 %v3235_v28  ;;  %v3298_v28 = vld [vmem:[#allocation9 + $0x16c] ss:$16 sps:$4 sm:$0xff]  }
 0x3eb   :  { %1747 = vmatpush1.bf16.msra.mxu0 %v3179_v33  ;;  %2174 = vmatpush1.bf16.msra.mxu1 %v3233_v29  ;;  %v3296_v29 = vld [vmem:[#allocation9 + $0x168] ss:$16 sps:$4 sm:$0xff]  }
 0x3ec   :  { %1748 = vmatprep.subr.bf16.mxu0 %v3184_v34  ;;  %2175 = vmatprep.subr.bf16.mxu1 %v3241_v30  ;;  %v3304_v30 = vld [vmem:[#allocation9 + $0x14c] ss:$16 sps:$4 sm:$0xff]  }
 0x3ef   :  { %1749 = vmatpush1.bf16.msra.mxu0 %v3182_v41  ;;  %2176 = vmatpush1.bf16.msra.mxu1 %v3239_v35  ;;  %v3302_v35 = vld [vmem:[#allocation9 + $0x148] ss:$16 sps:$4 sm:$0xff]  }
 0x3f0   :  { %1750 = vmatprep.subr.bf16.mxu0 %v3187_v42  ;;  %2177 = vmatprep.subr.bf16.mxu1 %v3247_v36  ;;  %v3305_v36 = vld [vmem:[#allocation9 + $0x120] ss:$16 sps:$4 sm:$0xff]  }
 0x3f3   :  { %1751 = vmatpush1.bf16.msra.mxu0 %v3185_v52  ;;  %2178 = vmatpush1.bf16.msra.mxu1 %v3245_v37  ;;  %v3307_v37 = vld [vmem:[#allocation9 + $0x124] ss:$16 sps:$4 sm:$0xff]  }
 0x3f4   :  { %1752 = vmatprep.subr.bf16.mxu0 %v3190_v54  ;;  %2179 = vmatprep.subr.bf16.mxu1 %v3253_v38  ;;  %v3308_v38 = vld [vmem:[#allocation9 + $0x128] ss:$16 sps:$4 sm:$0xff]  }
 0x3f7   :  { %1753 = vmatpush1.bf16.msra.mxu0 %v3188_v58  ;;  %2180 = vmatpush1.bf16.msra.mxu1 %v3251_v39  ;;  %v3310_v39 = vld [vmem:[#allocation9 + $0x12c] ss:$16 sps:$4 sm:$0xff]  }
 0x3f8   :  { %1754 = vmatprep.subr.bf16.mxu0 %v3193_v55  ;;  %2181 = vmatprep.subr.bf16.mxu1 %v3259_v40  ;;  %v3313_v40 = vld [vmem:[#allocation9 + $0x104] ss:$16 sps:$4 sm:$0xff]  }
 0x3fb   :  { %1755 = vmatpush1.bf16.msra.mxu0 %v3191_v59  ;;  %2182 = vmatpush1.bf16.msra.mxu1 %v3257_v43  ;;  %v3224_v59 = vld [vmem:[#allocation9 + $0xe8] ss:$16 sps:$4 sm:$0xff]   ;;  %v3311_v43 = vld [vmem:[#allocation9 + $0x100] ss:$16 sps:$4 sm:$0xff]  }
 0x3fc   :  { %1756 = vmatprep.subr.bf16.mxu0 %v3196_v4  ;;  %2183 = vmatprep.subr.bf16.mxu1 %v3265_v44  ;;  %v3316_v44 = vld [vmem:[#allocation9 + $0x10c] ss:$16 sps:$4 sm:$0xff]  }
 0x3ff   :  { %1757 = vmatpush1.bf16.msra.mxu0 %v3194_v5  ;;  %2184 = vmatpush1.bf16.msra.mxu1 %v3263_v45  ;;  %v3232_v5 = vld [vmem:[#allocation9 + $0xcc] ss:$16 sps:$4 sm:$0xff]   ;;  %v3314_v45 = vld [vmem:[#allocation9 + $0x108] ss:$16 sps:$4 sm:$0xff]  }
 0x400   :  { %1758 = vmatprep.subr.bf16.mxu0 %v3199_v7  ;;  %2185 = vmatprep.subr.bf16.mxu1 %v3271_v46  ;;  %v3230_v7 = vld [vmem:[#allocation9 + $0xc8] ss:$16 sps:$4 sm:$0xff]   ;;  %v3597_v46 = vmov 0.0  }
 0x403   :  { %1759 = vmatpush2.bf16.msra.mxu0 %v3197_v53  ;;  %2186 = vmatpush2.bf16.msra.mxu1 %v3269_v47  ;;  %v3238_v53 = vld [vmem:[#allocation9 + $0xac] ss:$16 sps:$4 sm:$0xff]  }
 0x404   :  { %1760 = vmatprep.subr.bf16.mxu0 %v3202_v8  ;;  %2187 = vmatprep.subr.bf16.mxu1 %v3277_v49  ;;  %v3236_v8 = vld [vmem:[#allocation9 + $0xa8] ss:$16 sps:$4 sm:$0xff]   ;;  %v1570_v47 = vld [vmem:[#allocation7] sm:$0x3] }
 0x405   :  { %v1575_v49 = vrot.slane %v1570_v47, %v3743_v1  ;;  %v3318_v1 = vld [vmem:[%s3977_s11 + $0x30] sm:$0xff]  }
 0x407   :  { %1761 = vmatpush2.bf16.msra.mxu0 %v3200_v0  ;;  %2188 = vmatpush2.bf16.msra.mxu1 %v3275_v50  ;;  %v3244_v0 = vld [vmem:[#allocation9 + $0x8c] ss:$16 sps:$4 sm:$0xff]   ;;  %v1579_v50 = vrot.slane %v1570_v47, %v3749_v3  ;;  %v2857_v47 = vld [vmem:[#allocation18] ss:$0 sm:$0xff] }
 0x408   :  { %1762 = vmatprep.subr.bf16.mxu0 %v3205_v9  ;;  %2189 = vmatprep.subr.bf16.mxu1 %v3283_v51  ;;  %v3242_v9 = vld [vmem:[#allocation9 + $0x88] ss:$16 sps:$4 sm:$0xff]  }
 0x409   :  { %v3319_v3 = vld [vmem:[%s3977_s11 + $0x28] sm:$0xff]  }
 0x40b   :  { %1763 = vmatpush2.bf16.msra.mxu0 %v3203_v63  ;;  %2190 = vmatpush2.bf16.msra.mxu1 %v3281_v56  ;;  %v3250_v63 = vld [vmem:[#allocation9 + $0x6c] ss:$16 sps:$4 sm:$0xff]  }
 0x40c   :  { %1764 = vmatprep.subr.bf16.mxu0 %v3208_v11  ;;  %2191 = vmatprep.subr.bf16.mxu1 %v3289_v57  ;;  %v3256_v11 = vld [vmem:[#allocation9 + $0x4c] ss:$16 sps:$4 sm:$0xff]  }
 0x40f   :  { %1765 = vmatpush2.bf16.msra.mxu0 %v3206_v10  ;;  %2192 = vmatpush2.bf16.msra.mxu1 %v3287_v60  ;;  %v3248_v10 = vld [vmem:[#allocation9 + $0x68] ss:$16 sps:$4 sm:$0xff]  }
 0x410   :  { %1766 = vmatprep.subr.bf16.mxu0 %v3211_v12  ;;  %2193 = vmatprep.subr.bf16.mxu1 %v3295_v62  ;;  %v3262_v12 = vld [vmem:[#allocation9 + $0x2c] ss:$16 sps:$4 sm:$0xff]  }
 0x413   :  { %1767 = vmatpush2.bf16.msra.mxu0 %v3209_v48  ;;  %2194 = vmatpush2.bf16.msra.mxu1 %v3293_v2  ;;  %v3254_v48 = vld [vmem:[#allocation9 + $0x48] ss:$16 sps:$4 sm:$0xff]  }
 0x414   :  { %1768 = vmatprep.subr.bf16.mxu0 %v3214_v13  ;;  %2195 = vmatprep.subr.bf16.mxu1 %v3301_v6  ;;  %v3260_v13 = vld [vmem:[#allocation9 + $0x28] ss:$16 sps:$4 sm:$0xff]  }
 0x415   :  { %v3317_v6 = vld [vmem:[%s3977_s11 + $0x38] sm:$0xff]  }
 0x417   :  { %1769 = vmatpush2.bf16.msra.mxu0 %v3212_v14  ;;  %2196 = vmatpush2.bf16.msra.mxu1 %v3299_v21  ;;  %v3268_v14 = vld [vmem:[#allocation9 + $0xc] ss:$16 sps:$4 sm:$0xff]  }
 0x418   :  { %1770 = vmatprep.subr.bf16.mxu0 %v3217_v15  ;;  %v3266_v15 = vld [vmem:[#allocation9 + $0x8] ss:$16 sps:$4 sm:$0xff]   ;;  %2197 = vmatprep.subr.bf16.mxu1 %v3307_v37 }
 0x41b   :  { %1771 = vmatpush2.bf16.msra.mxu0 %v3215_v16  ;;  %v3274_v16 = vld [vmem:[#allocation9 + $0x1ec] ss:$16 sps:$4 sm:$0xff]   ;;  %2198 = vmatpush2.bf16.msra.mxu1 %v3305_v36  ;;  %v2851_v36 = vld [vmem:[#allocation15] ss:$0 sm:$0xff] }
 0x41c   :  { %1772 = vmatprep.subr.bf16.mxu0 %v3220_v17  ;;  %v3272_v17 = vld [vmem:[#allocation9 + $0x1e8] ss:$16 sps:$4 sm:$0xff]   ;;  %2199 = vmatprep.subr.bf16.mxu1 %v3313_v40 }
 0x41f   :  { %1773 = vmatpush2.bf16.msra.mxu0 %v3218_v18  ;;  %v3280_v18 = vld [vmem:[#allocation9 + $0x1cc] ss:$16 sps:$4 sm:$0xff]   ;;  %2200 = vmatpush2.bf16.msra.mxu1 %v3311_v43 }
 0x420   :  { %2210 = vmatprep.subr.bf16.mxu0 %v3226_v25  ;;  %v3284_v25 = vld [vmem:[#allocation9 + $0x1a8] ss:$16 sps:$4 sm:$0xff]   ;;  %2887 = vmatprep.subr.bf16.mxu1 %v3597_v46 }
 0x4a2   :  { %v1476_v22 = vpop.f32.mrf.mxu0  ;;  %v1525_v23 = vpop.f32.mrf.mxu1 }
 0x4a3   :  { %3337 = vrcp.f32 %v1525_v23  ;;  %v3320_v23 = vld [vmem:[%s3977_s11 + $0x20] sm:$0xff]  }
 0x4a4   :  { %v1478_v24 = vpop.f32.mrf.mxu0  ;;  %v1527_v31 = vpop.f32.mrf.mxu1 }
 0x4a5   :  { %3339 = vrcp.f32 %v1527_v31  ;;  %v3322_v31 = vld [vmem:[%s3977_s11 + $0x10] sm:$0xff]  }
 0x4a6   :  { %v1480_v32 = vpop.f32.mrf.mxu0  ;;  %v1529_v33 = vpop.f32.mrf.mxu1 }
 0x4a7   :  { %v3323_v32 = vld [vmem:[%s3977_s11 + $0x8] sm:$0xff]   ;;  %v3324_v33 = vld [vmem:[%s3977_s11] sm:$0xff]  }
 0x4a8   :  { %v1481_v34 = vpop.f32.mrf.mxu0  ;;  %v1530_v41 = vpop.f32.mrf.mxu1 }
 0x4a9   :  { %v2841_v41 = vld [vmem:[#allocation10] ss:$0 sm:$0xff] }
 0x4b0   :  { %v3338_v42 = vpop.eup %3337 }
 0x4b1   :  { %v1534_v54 = vmul.f32 %v3338_v42, %v1476_v22 }
 0x4b2   :  { %v3340_v52 = vpop.eup %3339 }
 0x4b3   :  { %v1535_v58 = vmul.f32 %v3340_v52, %v1478_v24  ;;  %v1536_v4 = vpack.c.bf16 %v1534_v54, %v1534_v54  ;;  %v3321_v24 = vld [vmem:[%s3977_s11 + $0x18] sm:$0xff]  }
 0x4b5   :  { %v1537_v55 = vpack.c.bf16 %v1535_v58, %v1535_v58 }
 0x4b7   :  { %1774 = vmatprep.mubr.bf16.mxu0 %v1537_v55 }
 0x4b8   :  { %1775 = vmatmul.mubr.bf16.vlgmr.msra.gmra.mxu0 %v1536_v4 }
 0x4b9   :  { %2211 = vmatpush1.bf16.msra.mxu0 %v3224_v59 }
 0x4ba   :  { %2212 = vmatprep.subr.bf16.mxu0 %v3232_v5 }
 0x4bd   :  { %2213 = vmatpush1.bf16.msra.mxu0 %v3230_v7 }
 0x4be   :  { %2214 = vmatprep.subr.bf16.mxu0 %v3238_v53 }
 0x4c1   :  { %2215 = vmatpush1.bf16.msra.mxu0 %v3236_v8 }
 0x4c2   :  { %2216 = vmatprep.subr.bf16.mxu0 %v3244_v0 }
 0x4c5   :  { %2217 = vmatpush1.bf16.msra.mxu0 %v3242_v9 }
 0x4c6   :  { %2218 = vmatprep.subr.bf16.mxu0 %v3250_v63 }
 0x4c9   :  { %2219 = vmatpush1.bf16.msra.mxu0 %v3248_v10 }
 0x4ca   :  { %2220 = vmatprep.subr.bf16.mxu0 %v3256_v11  ;;  %v3325_v11 = vld [vmem:[#allocation13 + $0x18] sm:$0xff]  }
 0x4cd   :  { %2221 = vmatpush1.bf16.msra.mxu0 %v3254_v48 }
 0x4ce   :  { %2222 = vmatprep.subr.bf16.mxu0 %v3262_v12  ;;  %v3326_v12 = vld [vmem:[#allocation13 + $0x10] sm:$0xff]  }
 0x4d1   :  { %2223 = vmatpush1.bf16.msra.mxu0 %v3260_v13  ;;  %v3327_v13 = vld [vmem:[#allocation13 + $0x8] sm:$0xff]  }
 0x4d2   :  { %2224 = vmatprep.subr.bf16.mxu0 %v3268_v14  ;;  %v3328_v14 = vld [vmem:[#allocation13] sm:$0xff]  }
 0x4d5   :  { %2225 = vmatpush1.bf16.msra.mxu0 %v3266_v15  ;;  %v2842_v15 = vld [vmem:[#allocation12] ss:$0 sm:$0xff] }
 0x4d6   :  { %2226 = vmatprep.subr.bf16.mxu0 %v3274_v16 }
 0x4d9   :  { %2227 = vmatpush2.bf16.msra.mxu0 %v3272_v17 }
 0x4da   :  { %2228 = vmatprep.subr.bf16.mxu0 %v3280_v18 }
 0x4dd   :  { %2229 = vmatpush2.bf16.msra.mxu0 %v3278_v19  ;;  %v3329_v19 = vld [vmem:[#allocation16 + $0x28] sm:$0xff]  }
 0x4de   :  { %2230 = vmatprep.subr.bf16.mxu0 %v3286_v20 }
 0x4e1   :  { %2231 = vmatpush2.bf16.msra.mxu0 %v3284_v25 }
 0x4e2   :  { %2232 = vmatprep.subr.bf16.mxu0 %v3292_v26 }
 0x4e5   :  { %2233 = vmatpush2.bf16.msra.mxu0 %v3290_v27  ;;  %v3330_v27 = vld [vmem:[#allocation16 + $0x20] sm:$0xff]  }
 0x4e6   :  { %2234 = vmatprep.subr.bf16.mxu0 %v3298_v28  ;;  %v3331_v28 = vld [vmem:[#allocation16 + $0x18] sm:$0xff]  }
 0x4e9   :  { %2235 = vmatpush2.bf16.msra.mxu0 %v3296_v29  ;;  %v3332_v29 = vld [vmem:[#allocation16 + $0x10] sm:$0xff]  }
 0x4ea   :  { %2236 = vmatprep.subr.bf16.mxu0 %v3304_v30  ;;  %v3333_v30 = vld [vmem:[#allocation16 + $0x8] sm:$0xff]  }
 0x4ed   :  { %2237 = vmatpush2.bf16.msra.mxu0 %v3302_v35  ;;  %v3334_v35 = vld [vmem:[#allocation16] sm:$0xff]  }
 0x4ee   :  { %2238 = vmatprep.subr.bf16.mxu0 %v3310_v39 }
 0x4f1   :  { %2239 = vmatpush2.bf16.msra.mxu0 %v3308_v38 }
 0x4f2   :  { %2240 = vmatprep.subr.bf16.mxu0 %v3316_v44 }
 0x4f5   :  { %2241 = vmatpush2.bf16.msra.mxu0 %v3314_v45 }
 0x578   :  { %v1776_v51 = vpop.f32.mrf.mxu0 }
 0x579   :  { %v1777_v56 = vadd.f32 %v1776_v51, %v1575_v49 }
 0x57a   :  { %v1778_v57 = vpop.f32.mrf.mxu0 }
 0x57b   :  { %v1779_v60 = vadd.f32 %v1778_v57, %v1579_v50  ;;  %v1783_v21 = vpack.c.bf16 %v1777_v56, %v1777_v56 }
 0x57c   :  { %v1780_v62 = vpop.f32.mrf.mxu0 }
 0x57d   :  { %v1784_v2 = vpack.c.bf16 %v1779_v60, %v1779_v60 }
 0x57e   :  { %v1781_v22 = vpop.f32.mrf.mxu0 }
 0x57f   :  { %2201 = vmatprep.mubr.bf16.mxu1 %v1784_v2  ;;  %2242 = vmatprep.mubr.bf16.mxu0 %v1784_v2  ;;  %v2569_v2 = vand.u32 127, %v259_v61 }
 0x580   :  { %2202 = vmatmul.mubr.bf16.vlgmr.msra.gmra.mxu1 %v1783_v21  ;;  %2243 = vmatmul.mubr.bf16.vlgmr.msra.gmra.mxu0 %v1783_v21 }
 0x581   :  { %2888 = vmatpush3.bf16.msra.mxu1 %v3317_v6  ;;  %2903 = vmatprep.mubr.msk.bf16.mxu1 %vm3598_vm6, %v3597_v46  ;;  %vm2570_vm8 = vcmp.ge.s32.totalorder %v2569_v2, 7  ;;  %vm2571_vm9 = vcmp.lt.s32.totalorder %v2569_v2, 14 }
 0x582   :  { %2889 = vmatprep.subr.bf16.mxu1 %v3597_v46  ;;  %vm2572_vm10 = vmand %vm2570_vm8, %vm2571_vm9 }
 0x585   :  { %2890 = vmatpush3.bf16.msra.mxu1 %v3318_v1 }
 0x586   :  { %2891 = vmatprep.subr.bf16.mxu1 %v3597_v46 }
 0x589   :  { %2892 = vmatpush3.bf16.msra.mxu1 %v3319_v3 }
 0x58a   :  { %2893 = vmatprep.subr.bf16.mxu1 %v3597_v46 }
 0x58d   :  { %2894 = vmatpush3.bf16.msra.mxu1 %v3320_v23 }
 0x58e   :  { %2895 = vmatprep.subr.bf16.mxu1 %v3597_v46 }
 0x591   :  { %2896 = vmatpush3.bf16.msra.mxu1 %v3321_v24 }
 0x592   :  { %2897 = vmatprep.subr.bf16.mxu1 %v3597_v46 }
 0x595   :  { %2898 = vmatpush3.bf16.msra.mxu1 %v3322_v31 }
 0x596   :  { %2899 = vmatprep.subr.bf16.mxu1 %v3597_v46 }
 0x599   :  { %2900 = vmatpush3.bf16.msra.mxu1 %v3323_v32 }
 0x59a   :  { %2901 = vmatprep.subr.bf16.mxu1 %v3597_v46 }
 0x59d   :  { %2902 = vmatpush3.bf16.msra.mxu1 %v3324_v33 }
 0x59e   :  { %2907 = vmatprep.subr.bf16.mxu1 %v3597_v46 }
 0x640   :  { %v2203_v34 = vpop.f32.mrf.mxu1  ;;  %v2244_v42 = vpop.f32.mrf.mxu0 }
 0x641   :  { %v2258_v58 = vadd.f32 %v2841_v41, %v2203_v34  ;;  %v2264_v5 = vrot.slane %v2244_v42, 4 }
 0x642   :  { %v2205_v52 = vpop.f32.mrf.mxu1  ;;  %v2246_v54 = vpop.f32.mrf.mxu0 }
 0x643   :  { %v2260_v55 = vrot.slane %v2205_v52, 2  ;;  %v2268_v9 = vrot.slane %v2246_v54, 6 }
 0x644   :  { %v2207_v59 = vpop.f32.mrf.mxu1  ;;  %v2248_v4 = vpop.f32.mrf.mxu0 }
 0x645   :  { %v2262_v7 = vadd.f32 %v2260_v55, %v2258_v58 }
 0x646   :  { %v2208_v53 = vpop.f32.mrf.mxu1  ;;  %v2249_v8 = vpop.f32.mrf.mxu0 }
 0x647   :  { %v2266_v0 = vadd.f32 %v2264_v5, %v2262_v7 }
 0x649   :  { %v2270_v63 = vadd.f32 %v2268_v9, %v2266_v0 }
 0x64b   :  { %v2271_v10 = vmax.f32 %v2270_v63, 0.0 }
 0x64d   :  { %v2272_v48 = vpack.c.bf16 %v2271_v10, %v2271_v10 }
 0x64f   :  { %2904 = vmatmul.mubr.bf16.vlgmr.msra.gmra.mxu1 %v2272_v48 }
 0x650   :  { %2908 = vmatpush3.bf16.msra.mxu1 %v3325_v11  ;;  %2915 = vmatprep.mubr.msk.bf16.mxu1 %vm3598_vm6, %v3597_v46 }
 0x651   :  { %2909 = vmatprep.subr.bf16.mxu1 %v3597_v46 }
 0x654   :  { %2910 = vmatpush3.bf16.msra.mxu1 %v3326_v12 }
 0x655   :  { %2911 = vmatprep.subr.bf16.mxu1 %v3597_v46 }
 0x658   :  { %2912 = vmatpush3.bf16.msra.mxu1 %v3327_v13 }
 0x659   :  { %2913 = vmatprep.subr.bf16.mxu1 %v3597_v46 }
 0x65c   :  { %2914 = vmatpush3.bf16.msra.mxu1 %v3328_v14 }
 0x65d   :  { %2919 = vmatprep.subr.bf16.mxu1 %v3597_v46 }
 0x70f   :  { %v2378_v16 = vpop.f32.mrf.mxu1 }
 0x710   :  { %v2379_v17 = vadd.f32 %v2842_v15, %v2378_v16 }
 0x711   :  { %v2905_v18 = vpop.f32.mrf.mxu1 }
 0x712   :  { %v2384_v20 = vpack.c.bf16 %v2379_v17, %v2379_v17 }
 0x713   :  { %v2381_v25 = vpop.f32.mrf.mxu1 }
 0x714   :  { %2916 = vmatmul.mubr.msk.bf16.vlgmr.msra.gmra.mxu1 %vm1431_vm5, %v2384_v20 }
 0x715   :  { %v2906_v26 = vpop.f32.mrf.mxu1  ;;  %2920 = vmatpush3.bf16.msra.mxu1 %v3329_v19  ;;  %2931 = vmatprep.mubr.msk.bf16.mxu1 %vm3598_vm6, %v3597_v46 }
 0x716   :  { %2921 = vmatprep.subr.bf16.mxu1 %v3597_v46 }
 0x719   :  { %2922 = vmatpush3.bf16.msra.mxu1 %v3330_v27 }
 0x71a   :  { %2923 = vmatprep.subr.bf16.mxu1 %v3597_v46 }
 0x71d   :  { %2924 = vmatpush3.bf16.msra.mxu1 %v3331_v28 }
 0x71e   :  { %2925 = vmatprep.subr.bf16.mxu1 %v3597_v46 }
 0x721   :  { %2926 = vmatpush3.bf16.msra.mxu1 %v3332_v29 }
 0x722   :  { %2927 = vmatprep.subr.bf16.mxu1 %v3597_v46 }
 0x725   :  { %2928 = vmatpush3.bf16.msra.mxu1 %v3333_v30 }
 0x726   :  { %2929 = vmatprep.subr.bf16.mxu1 %v3597_v46 }
 0x729   :  { %2930 = vmatpush3.bf16.msra.mxu1 %v3334_v35 }
 0x7d4   :  { %v2461_v37 = vpop.f32.mrf.mxu1 }
 0x7d5   :  { %v2462_v38 = vadd.f32 %v2851_v36, %v2461_v37 }
 0x7d6   :  { %v2917_v39 = vpop.f32.mrf.mxu1 }
 0x7d7   :  { %v2467_v40 = vmax.f32 %v2462_v38, 0.0 }
 0x7d8   :  { %v2464_v43 = vpop.f32.mrf.mxu1 }
 0x7d9   :  { %v2468_v44 = vpack.c.bf16 %v2467_v40, %v2467_v40 }
 0x7da   :  { %v2918_v45 = vpop.f32.mrf.mxu1 }
 0x7db   :  { %2932 = vmatmul.mubr.msk.bf16.vlgmr.msra.gmra.mxu1 %vm2524_vm7, %v2468_v44 }
 0x89b   :  { %v2562_v49 = vpop.f32.mrf.mxu1 }
 0x89c   :  { %v2563_v50 = vadd.f32 %v2857_v47, %v2562_v49 }
 0x89d   :  { %v2933_v51 = vpop.f32.mrf.mxu1 }
 0x89e   :  { %v2865_v56 = vmul.f32 -1.442695, %v2563_v50 }
 0x89f   :  { %v2565_v57 = vpop.f32.mrf.mxu1 }
 0x8a0   :  { %3341 = vpow2.f32 %v2865_v56 }
 0x8a1   :  { %v2934_v60 = vpop.f32.mrf.mxu1 }
 0x8ad   :  { %v3342_v46 = vpop.eup %3341 }
 0x8ae   :  { %v2576_v62 = vadd.f32 1.0, %v3342_v46 }
 0x8b0   :  { %3343 = vrcp.f32 %v2576_v62 }
 0x8bd   :  { %v3344_v6 = vpop.eup %3343 }
 0x8be   :  { %v2579_v21 = vsel %vm2572_vm10, %v3344_v6, %v2563_v50 }
 0x8bf   :  { %2580 = vst [vmem:[%s3983_s17] sm:$0x3] %v2579_v21 }
 0x8c0   :  { %2585 = vsyncpa [#allocation3], 1 }
 0x8c1   :  { %2586 = vsyncpa [#allocation5], 1 }
 0x8c2   :  { %2587 = vsyncpa [#allocation8], 1 }
 0x8c3   :  { %2588 = vsyncpa [#allocation11], 1 }
 0x8c4   :  { %2589 = vsyncpa [#allocation14], 1 }
 0x8c5   :  { %2590 = vsyncpa [#allocation17], 1 }

</bundles_post_ra>
